<compile_context>
chip_gen: v7x
topology: tpu7x:2x2x1
jax: 0.10.0
libtpu: 0.0.40
codegen_flags: <defaults>
</compile_context>

<pallas_src>
import functools

import jax
import jax.numpy as jnp
from jax.experimental import pallas as pl
from jax.experimental.pallas import tpu as pltpu

HIDDEN1 = 256
HIDDEN2 = 64
HIDDEN2_PAD = 128  # pad the 64-wide hidden layer to a full lane width


def _round_up(x, m):
    return ((x + m - 1) // m) * m


def _rec_mlp_kernel(uf_ref, if_ref,
                    w1_ref, b1_ref,
                    w2_ref, b2_ref,
                    w3_ref, b3_ref,
                    out_ref):
    # Fusion: elementwise multiply (matches torch.multiply), cast for the MXU.
    fusion = (uf_ref[...] * if_ref[...]).astype(jnp.float32)

    # Linear(F, 256) + ReLU  (bf16 matmul, f32 accumulate / epilogue)
    h1 = jnp.dot(fusion.astype(jnp.bfloat16), w1_ref[...],
                 preferred_element_type=jnp.float32)
    h1 = jnp.maximum(h1 + b1_ref[...], 0.0)

    # Linear(256, 64->padded 128) + ReLU
    h2 = jnp.dot(h1.astype(jnp.bfloat16), w2_ref[...],
                 preferred_element_type=jnp.float32)
    h2 = jnp.maximum(h2 + b2_ref[...], 0.0)

    # Linear(64, 1) as a lane reduction (no N=1 MXU matmul) + Sigmoid.
    # w3 is a zero-padded [1, 128] row, so padded lanes contribute nothing.
    z = jnp.sum(h2 * w3_ref[...], axis=-1, keepdims=True) + b3_ref[...]
    out_ref[...] = jax.nn.sigmoid(z)


def prepare_params(params):
    """Cast/pad parameters into the kernel layout (do once, reuse per call)."""
    w1 = params["w1"].astype(jnp.bfloat16)                      # [F, 256]
    b1 = params["b1"].astype(jnp.float32)                       # [1, 256]
    w2 = jnp.zeros((HIDDEN1, HIDDEN2_PAD), jnp.bfloat16)
    w2 = w2.at[:, :HIDDEN2].set(params["w2"].astype(jnp.bfloat16))   # [256, 128]
    b2 = jnp.zeros((1, HIDDEN2_PAD), jnp.float32)
    b2 = b2.at[:, :HIDDEN2].set(params["b2"].astype(jnp.float32))    # [1, 128]
    w3 = jnp.zeros((1, HIDDEN2_PAD), jnp.float32)
    w3 = w3.at[:, :HIDDEN2].set(params["w3"].reshape(1, HIDDEN2)
                                .astype(jnp.float32))                # [1, 128]
    b3 = params["b3"].reshape(1, 1).astype(jnp.float32)              # [1, 1]
    return (w1, b1, w2, b2, w3, b3)


def base_rec_model_forward(user_feature, item_feature, params):
    """Pallas implementation of BaseRecModel.forward.

    params: dict with w1 [F,256], b1 [1,256], w2 [256,64], b2 [1,64],
            w3 [64,1], b3 [1,1]  (weights stored as [in, out]).
    Returns: [B, 1] float32 sigmoid scores.
    """
    B, F = user_feature.shape
    w1, b1, w2, b2, w3, b3 = prepare_params(params)

    # Batch tile: big (HBM-bound kernel, ~0.35us per grid step), multiple of 256
    # so it is also a multiple of 128 for v5e's 4x128x128 MXU.
    TB = min(1024, _round_up(max(B, 1), 256))
    Bp = _round_up(B, TB)
    if Bp != B:
        pad = ((0, Bp - B), (0, 0))
        user_feature = jnp.pad(user_feature, pad)
        item_feature = jnp.pad(item_feature, pad)

    grid = (Bp // TB,)
    batch_spec = pl.BlockSpec((TB, F), lambda i: (i, 0))

    def resident(shape):
        # Weights/biases: same block every step -> stay VMEM-resident.
        return pl.BlockSpec(shape, lambda i: (0, 0))

    out = pl.pallas_call(
        _rec_mlp_kernel,
        out_shape=jax.ShapeDtypeStruct((Bp, 1), jnp.float32),
        grid=grid,
        in_specs=[
            batch_spec, batch_spec,
            resident(w1.shape), resident(b1.shape),
            resident(w2.shape), resident(b2.shape),
            resident(w3.shape), resident(b3.shape),
        ],
        out_specs=pl.BlockSpec((TB, 1), lambda i: (i, 0)),
        compiler_params=pltpu.CompilerParams(
            dimension_semantics=("parallel",)),
    )(user_feature, item_feature, w1, b1, w2, b2, w3, b3)

    return out[:B]


def init_params(key, feature_length):
    """Deterministic parameter init (PyTorch-Linear-style uniform bounds)."""
    def linear(k, fan_in, fan_out):
        kw, kb = jax.random.split(k)
        bound = 1.0 / jnp.sqrt(float(fan_in))
        # Stored as [in, out] (transposed w.r.t. torch's [out, in]).
        w = jax.random.uniform(kw, (fan_in, fan_out), jnp.float32, -bound, bound)
        b = jax.random.uniform(kb, (1, fan_out), jnp.float32, -bound, bound)
        return w, b

    k1, k2, k3 = jax.random.split(key, 3)
    w1, b1 = linear(k1, feature_length, HIDDEN1)
    w2, b2 = linear(k2, HIDDEN1, HIDDEN2)
    w3, b3 = linear(k3, HIDDEN2, 1)
    return {"w1": w1, "b1": b1, "w2": w2, "b2": b2, "w3": w3, "b3": b3}


def reference_forward(user_feature, item_feature, p):
    fusion = (user_feature * item_feature).astype(jnp.float32)
    h1 = jnp.maximum(fusion @ p["w1"] + p["b1"], 0.0)
    h2 = jnp.maximum(h1 @ p["w2"] + p["b2"], 0.0)
    return jax.nn.sigmoid(h2 @ p["w3"] + p["b3"])


if __name__ == "__main__":
    key = jax.random.PRNGKey(0)
    k_params, k_u, k_i = jax.random.split(key, 3)

    batch = 8
    feature_length = 32

    params = init_params(k_params, feature_length)
    user_feature = jax.random.normal(k_u, (batch, feature_length), jnp.float32)
    item_feature = jax.random.normal(k_i, (batch, feature_length), jnp.float32)

    out = base_rec_model_forward(user_feature, item_feature, params)
    out = jax.block_until_ready(out)

    ref = reference_forward(user_feature, item_feature, params)
    assert out.shape == (batch, 1)
    # bf16 matmuls vs. f32 reference: loose-but-meaningful tolerance on [0,1] outputs.
    assert jnp.allclose(out, ref, atol=2e-2, rtol=2e-2), float(jnp.max(jnp.abs(out - ref)))

    print("KERNEL_OK")
</pallas_src>

<mosaic_0001>
module attributes {stable_mosaic.version = 11 : i64} {
  func.func @_rec_mlp_kernel(%arg0: i32, %arg1: memref<256x32xf32, #tpu.memory_space<vmem>>, %arg2: memref<256x32xf32, #tpu.memory_space<vmem>>, %arg3: memref<32x256xbf16, #tpu.memory_space<vmem>>, %arg4: memref<1x256xf32, #tpu.memory_space<vmem>>, %arg5: memref<256x128xbf16, #tpu.memory_space<vmem>>, %arg6: memref<1x128xf32, #tpu.memory_space<vmem>>, %arg7: memref<1x128xf32, #tpu.memory_space<vmem>>, %arg8: memref<1x1xf32, #tpu.memory_space<vmem>>, %arg9: memref<256x1xf32, #tpu.memory_space<vmem>>) attributes {dimension_semantics = [#tpu.dimension_semantics<parallel>], iteration_bounds = array<i64: 1>, scalar_prefetch = 0 : i64, scratch_operands = 0 : i64, tpu.core_type = #tpu.core_type<tc>, window_params = [{transform_indices = @transform_0, window_bounds = array<i64: 256, 32>}, {transform_indices = @transform_1, window_bounds = array<i64: 256, 32>}, {pipeline_mode = #tpu.pipeline_mode<synchronous>, transform_indices = @transform_2, window_bounds = array<i64: 32, 256>}, {pipeline_mode = #tpu.pipeline_mode<synchronous>, transform_indices = @transform_3, window_bounds = array<i64: 1, 256>}, {pipeline_mode = #tpu.pipeline_mode<synchronous>, transform_indices = @transform_4, window_bounds = array<i64: 256, 128>}, {pipeline_mode = #tpu.pipeline_mode<synchronous>, transform_indices = @transform_5, window_bounds = array<i64: 1, 128>}, {pipeline_mode = #tpu.pipeline_mode<synchronous>, transform_indices = @transform_6, window_bounds = array<i64: 1, 128>}, {pipeline_mode = #tpu.pipeline_mode<synchronous>, transform_indices = @transform_7, window_bounds = array<i64: 1, 1>}, {transform_indices = @transform_8, window_bounds = array<i64: 256, 1>}]} {
    %c0 = arith.constant 0 : index
    %c0_0 = arith.constant 0 : index
    %0 = vector.load %arg1[%c0, %c0_0] : memref<256x32xf32, #tpu.memory_space<vmem>>, vector<256x32xf32>
    %c0_1 = arith.constant 0 : index
    %c0_2 = arith.constant 0 : index
    %1 = vector.load %arg2[%c0_1, %c0_2] : memref<256x32xf32, #tpu.memory_space<vmem>>, vector<256x32xf32>
    %2 = arith.mulf %0, %1 : vector<256x32xf32>
    %3 = arith.truncf %2 : vector<256x32xf32> to vector<256x32xbf16>
    %c0_3 = arith.constant 0 : index
    %c0_4 = arith.constant 0 : index
    %4 = vector.load %arg3[%c0_3, %c0_4] : memref<32x256xbf16, #tpu.memory_space<vmem>>, vector<32x256xbf16>
    %cst = arith.constant dense<0.000000e+00> : vector<256x256xf32>
    %5 = tpu.matmul %3, %4, %cst {dimension_numbers = #tpu.dot_dimension_numbers<[1], [0], [0], [1], [0, 0, 1, 1], [], []>} : vector<256x32xbf16>, vector<32x256xbf16>, vector<256x256xf32> -> vector<256x256xf32>
    %c0_5 = arith.constant 0 : index
    %c0_6 = arith.constant 0 : index
    %6 = vector.load %arg4[%c0_5, %c0_6] : memref<1x256xf32, #tpu.memory_space<vmem>>, vector<1x256xf32>
    %7 = vector.broadcast %6 : vector<1x256xf32> to vector<256x256xf32>
    %8 = arith.addf %5, %7 : vector<256x256xf32>
    %cst_7 = arith.constant 0.000000e+00 : f32
    %9 = vector.broadcast %cst_7 : f32 to vector<256x256xf32>
    %10 = arith.maximumf %8, %9 : vector<256x256xf32>
    %11 = arith.truncf %10 : vector<256x256xf32> to vector<256x256xbf16>
    %c0_8 = arith.constant 0 : index
    %c0_9 = arith.constant 0 : index
    %12 = vector.load %arg5[%c0_8, %c0_9] : memref<256x128xbf16, #tpu.memory_space<vmem>>, vector<256x128xbf16>
    %cst_10 = arith.constant dense<0.000000e+00> : vector<256x128xf32>
    %13 = tpu.matmul %11, %12, %cst_10 {dimension_numbers = #tpu.dot_dimension_numbers<[1], [0], [0], [1], [0, 0, 1, 1], [], []>} : vector<256x256xbf16>, vector<256x128xbf16>, vector<256x128xf32> -> vector<256x128xf32>
    %c0_11 = arith.constant 0 : index
    %c0_12 = arith.constant 0 : index
    %14 = vector.load %arg6[%c0_11, %c0_12] : memref<1x128xf32, #tpu.memory_space<vmem>>, vector<1x128xf32>
    %15 = vector.broadcast %14 : vector<1x128xf32> to vector<256x128xf32>
    %16 = arith.addf %13, %15 : vector<256x128xf32>
    %cst_13 = arith.constant 0.000000e+00 : f32
    %17 = vector.broadcast %cst_13 : f32 to vector<256x128xf32>
    %18 = arith.maximumf %16, %17 : vector<256x128xf32>
    %c0_14 = arith.constant 0 : index
    %c0_15 = arith.constant 0 : index
    %19 = vector.load %arg7[%c0_14, %c0_15] : memref<1x128xf32, #tpu.memory_space<vmem>>, vector<1x128xf32>
    %20 = vector.broadcast %19 : vector<1x128xf32> to vector<256x128xf32>
    %21 = arith.mulf %18, %20 : vector<256x128xf32>
    %cst_16 = arith.constant dense<0.000000e+00> : vector<256xf32>
    %22 = vector.multi_reduction <add>, %21, %cst_16 [1] : vector<256x128xf32> to vector<256xf32>
    %23 = vector.shape_cast %22 : vector<256xf32> to vector<256x1xf32>
    %c0_17 = arith.constant 0 : index
    %c0_18 = arith.constant 0 : index
    %24 = vector.load %arg8[%c0_17, %c0_18] : memref<1x1xf32, #tpu.memory_space<vmem>>, vector<1x1xf32>
    %25 = vector.broadcast %24 : vector<1x1xf32> to vector<256x1xf32>
    %26 = arith.addf %23, %25 : vector<256x1xf32>
    %27 = arith.negf %26 : vector<256x1xf32>
    %28 = math.exp %27 : vector<256x1xf32>
    %cst_19 = arith.constant 1.000000e+00 : f32
    %29 = vector.broadcast %cst_19 : f32 to vector<256x1xf32>
    %30 = arith.addf %29, %28 : vector<256x1xf32>
    %31 = arith.divf %29, %30 : vector<256x1xf32>
    %c0_20 = arith.constant 0 : index
    %c0_21 = arith.constant 0 : index
    %32 = vector.load %arg9[%c0_20, %c0_21] : memref<256x1xf32, #tpu.memory_space<vmem>>, vector<256x1xf32>
    tpu.vector_store %arg9[%c0_20, %c0_21], %31 {strides = array<i32>} : memref<256x1xf32, #tpu.memory_space<vmem>>, vector<256x1xf32>,
    return
  }
  func.func @transform_0(%arg0: i32) -> (i32, i32) {
    %c0_i32 = arith.constant 0 : i32
    %c0_i32_0 = arith.constant 0 : i32
    return %arg0, %c0_i32 : i32, i32
  }
  func.func @transform_1(%arg0: i32) -> (i32, i32) {
    %c0_i32 = arith.constant 0 : i32
    %c0_i32_0 = arith.constant 0 : i32
    return %arg0, %c0_i32 : i32, i32
  }
  func.func @transform_2(%arg0: i32) -> (i32, i32) {
    %c0_i32 = arith.constant 0 : i32
    %c0_i32_0 = arith.constant 0 : i32
    %c0_i32_1 = arith.constant 0 : i32
    return %c0_i32, %c0_i32_0 : i32, i32
  }
  func.func @transform_3(%arg0: i32) -> (i32, i32) {
    %c0_i32 = arith.constant 0 : i32
    %c0_i32_0 = arith.constant 0 : i32
    %c0_i32_1 = arith.constant 0 : i32
    return %c0_i32, %c0_i32_0 : i32, i32
  }
  func.func @transform_4(%arg0: i32) -> (i32, i32) {
    %c0_i32 = arith.constant 0 : i32
    %c0_i32_0 = arith.constant 0 : i32
    %c0_i32_1 = arith.constant 0 : i32
    return %c0_i32, %c0_i32_0 : i32, i32
  }
  func.func @transform_5(%arg0: i32) -> (i32, i32) {
    %c0_i32 = arith.constant 0 : i32
    %c0_i32_0 = arith.constant 0 : i32
    %c0_i32_1 = arith.constant 0 : i32
    return %c0_i32, %c0_i32_0 : i32, i32
  }
  func.func @transform_6(%arg0: i32) -> (i32, i32) {
    %c0_i32 = arith.constant 0 : i32
    %c0_i32_0 = arith.constant 0 : i32
    %c0_i32_1 = arith.constant 0 : i32
    return %c0_i32, %c0_i32_0 : i32, i32
  }
  func.func @transform_7(%arg0: i32) -> (i32, i32) {
    %c0_i32 = arith.constant 0 : i32
    %c0_i32_0 = arith.constant 0 : i32
    %c0_i32_1 = arith.constant 0 : i32
    return %c0_i32, %c0_i32_0 : i32, i32
  }
  func.func @transform_8(%arg0: i32) -> (i32, i32) {
    %c0_i32 = arith.constant 0 : i32
    %c0_i32_0 = arith.constant 0 : i32
    return %arg0, %c0_i32 : i32, i32
  }
}

</mosaic_0001>

<bundles_post_ra>
// kernel: tpu_custom_call.1
= control target key start
LH: loop header
LB: loop body
LE: loop exit
PB: predicated region body
PF: predicated region fallthrough
CT: control target
= control target key end

     0   :  { %v1567_v1 = vmov 0   ;;  %vm180_vm0 = vcmask 261120   ;;  %vm1180_vm1 = vcmask 7168   ;;  %s2279_s2 = inlined_call_operand.vmem [shape: bf16[32,256], index: 2, kind: input, shape index: {}]   ;;  %s2280_s0 = inlined_call_operand.vmem [shape: f32[256,32], index: 0, kind: input, shape index: {}]   ;;  %s2281_s1 = inlined_call_operand.vmem [shape: f32[256,32], index: 1, kind: input, shape index: {}]   ;;  %s2282_s4 = inlined_call_operand.vmem [shape: bf16[256,128], index: 4, kind: input, shape index: {}]   ;;  %s2283_s3 = inlined_call_operand.vmem [shape: f32[1,256], index: 3, kind: input, shape index: {}]   ;;  %s2284_s5 = inlined_call_operand.vmem [shape: f32[1,128], index: 5, kind: input, shape index: {}]   ;;  %s2285_s6 = inlined_call_operand.vmem [shape: f32[1,128], index: 6, kind: input, shape index: {}]   ;;  %s2286_s7 = inlined_call_operand.<no memory space> [shape: f32[1,1], index: 7, kind: input, shape index: {}]   ;;  %s2287_s8 = inlined_call_operand.vmem [shape: f32[256,1], index: 8, kind: output, shape index: {}]  }
   0x1   :  { %v1417_v0 = vld [vmem:[%s2279_s2 + $0x4] ss:$8 sps:$4 sm:$0xff]   ;;  %261 = vmatprep.mubr.bf16.mxu0 %v1567_v1  ;;  %v1419_v2 = vld [vmem:[%s2279_s2] ss:$8 sps:$4 sm:$0xff]   ;;  %v1420_v3 = vld [vmem:[%s2279_s2 + $0x14] ss:$8 sps:$4 sm:$0xff]  }
   0x2   :  { %229 = vmatprep.subr.bf16.mxu0 %v1417_v0  ;;  %v1422_v4 = vld [vmem:[%s2279_s2 + $0x10] ss:$8 sps:$4 sm:$0xff]   ;;  %v32_v5 = vld [vmem:[%s2280_s0] sm:$0xff]  ;;  %v33_v6 = vld [vmem:[%s2280_s0 + $0x8] sm:$0xff] }
   0x3   :  { %230 = vmatpush1.bf16.msra.mxu0 %v1419_v2  ;;  %v64_v7 = vld [vmem:[%s2281_s1] sm:$0xff]  ;;  %v65_v8 = vld [vmem:[%s2281_s1 + $0x8] sm:$0xff]  ;;  %v34_v12 = vld [vmem:[%s2280_s0 + $0x10] sm:$0xff] }
   0x4   :  { %231 = vmatprep.subr.bf16.mxu0 %v1420_v3  ;;  %v96_v9 = vmul.f32 %v64_v7, %v32_v5  ;;  %v97_v10 = vmul.f32 %v65_v8, %v33_v6  ;;  %v35_v13 = vld [vmem:[%s2280_s0 + $0x18] sm:$0xff]  ;;  %v66_v14 = vld [vmem:[%s2281_s1 + $0x10] sm:$0xff]  ;;  %v36_v18 = vld [vmem:[%s2280_s0 + $0x20] sm:$0xff] }
   0x5   :  { %v67_v15 = vld [vmem:[%s2281_s1 + $0x18] sm:$0xff]  ;;  %v98_v16 = vmul.f32 %v66_v14, %v34_v12  ;;  %v37_v19 = vld [vmem:[%s2280_s0 + $0x28] sm:$0xff]  ;;  %v68_v20 = vld [vmem:[%s2281_s1 + $0x20] sm:$0xff] }
   0x6   :  { %v128_v11 = vpack.c.bf16 %v97_v10, %v96_v9  ;;  %v99_v17 = vmul.f32 %v67_v15, %v35_v13  ;;  %v69_v21 = vld [vmem:[%s2281_s1 + $0x28] sm:$0xff]  ;;  %v48_v22 = vld [vmem:[%s2280_s0 + $0x80] sm:$0xff]  ;;  %v50_v27 = vld [vmem:[%s2280_s0 + $0x90] sm:$0xff]  ;;  %v100_v43 = vmul.f32 %v68_v20, %v36_v18 }
   0x7   :  { %232 = vmatpush1.bf16.msra.mxu0 %v1422_v4  ;;  %v49_v23 = vld [vmem:[%s2280_s0 + $0x88] sm:$0xff]  ;;  %v80_v25 = vld [vmem:[%s2281_s1 + $0x80] sm:$0xff]  ;;  %v51_v30 = vld [vmem:[%s2280_s0 + $0x98] sm:$0xff]  ;;  %v101_v44 = vmul.f32 %v69_v21, %v37_v19 }
   0x8   :  { %v129_v24 = vpack.c.bf16 %v99_v17, %v98_v16  ;;  %v81_v26 = vld [vmem:[%s2281_s1 + $0x88] sm:$0xff]  ;;  %v1679_v28 = vmul.f32 %v80_v25, %v48_v22  ;;  %v82_v31 = vld [vmem:[%s2281_s1 + $0x90] sm:$0xff]  ;;  %v83_v32 = vld [vmem:[%s2281_s1 + $0x98] sm:$0xff] }
   0x9   :  { %v1681_v29 = vmul.f32 %v81_v26, %v49_v23  ;;  %v1692_v33 = vmul.f32 %v82_v31, %v50_v27  ;;  %v1694_v34 = vmul.f32 %v83_v32, %v51_v30  ;;  %v52_v35 = vld [vmem:[%s2280_s0 + $0xa0] sm:$0xff]  ;;  %v53_v36 = vld [vmem:[%s2280_s0 + $0xa8] sm:$0xff]  ;;  %v54_v41 = vld [vmem:[%s2280_s0 + $0xb0] sm:$0xff]  ;;  %v130_v7 = vpack.c.bf16 %v101_v44, %v100_v43 }
   0xa   :  { %1221 = vmatmul.mubr.msk.bf16.vlgmr.msra.gmra.mrb[0].mxu0 %vm180_vm0, %v128_v11  ;;  %v84_v37 = vld [vmem:[%s2281_s1 + $0xa0] sm:$0xff]  ;;  %v85_v39 = vld [vmem:[%s2281_s1 + $0xa8] sm:$0xff]  ;;  %v55_v42 = vld [vmem:[%s2280_s0 + $0xb8] sm:$0xff] }
   0xb   :  { %271 = vmatprep.mubr.bf16.mxu0 %v1567_v1  ;;  %v136_v38 = vpack.c.bf16 %v1681_v29, %v1679_v28  ;;  %v1710_v40 = vmul.f32 %v84_v37, %v52_v35  ;;  %v137_v45 = vpack.c.bf16 %v1694_v34, %v1692_v33  ;;  %v1721_v46 = vmul.f32 %v85_v39, %v53_v36  ;;  %v86_v47 = vld [vmem:[%s2281_s1 + $0xb0] sm:$0xff]  ;;  %v87_v48 = vld [vmem:[%s2281_s1 + $0xb8] sm:$0xff]  ;;  %v56_v49 = vld [vmem:[%s2280_s0 + $0xc0] sm:$0xff] }
   0xc   :  { %v1733_v50 = vmul.f32 %v86_v47, %v54_v41  ;;  %v1735_v51 = vmul.f32 %v87_v48, %v55_v42  ;;  %v57_v52 = vld [vmem:[%s2280_s0 + $0xc8] sm:$0xff]  ;;  %v88_v53 = vld [vmem:[%s2281_s1 + $0xc0] sm:$0xff]  ;;  %v58_v58 = vld [vmem:[%s2280_s0 + $0xd0] sm:$0xff] }
   0xd   :  { %v89_v54 = vld [vmem:[%s2281_s1 + $0xc8] sm:$0xff]  ;;  %v138_v55 = vpack.c.bf16 %v1721_v46, %v1710_v40  ;;  %v1748_v56 = vmul.f32 %v88_v53, %v56_v49  ;;  %v59_v59 = vld [vmem:[%s2280_s0 + $0xd8] sm:$0xff]  ;;  %v90_v60 = vld [vmem:[%s2281_s1 + $0xd0] sm:$0xff]  ;;  %v150_v40 = vlaneseq }
   0xe   :  { %v1750_v57 = vmul.f32 %v89_v54, %v57_v52  ;;  %v38_v61 = vld [vmem:[%s2280_s0 + $0x30] sm:$0xff]  ;;  %v39_v62 = vld [vmem:[%s2280_s0 + $0x38] sm:$0xff]  ;;  %v139_v2 = vpack.c.bf16 %v1735_v51, %v1733_v50  ;;  %v1778_v4 = vmul.f32 %v90_v60, %v58_v58  ;;  %v60_v5 = vld [vmem:[%s2280_s0 + $0xe0] sm:$0xff] }
   0xf   :  { %v70_v63 = vld [vmem:[%s2281_s1 + $0x30] sm:$0xff]  ;;  %v71_v0 = vld [vmem:[%s2281_s1 + $0x38] sm:$0xff]  ;;  %v61_v6 = vld [vmem:[%s2280_s0 + $0xe8] sm:$0xff] }
  0x10   :  { %v91_v3 = vld [vmem:[%s2281_s1 + $0xd8] sm:$0xff]  ;;  %v140_v8 = vpack.c.bf16 %v1750_v57, %v1748_v56  ;;  %v92_v10 = vld [vmem:[%s2281_s1 + $0xe0] sm:$0xff]  ;;  %v93_v11 = vld [vmem:[%s2281_s1 + $0xe8] sm:$0xff]  ;;  %v103_v25 = vmul.f32 %v71_v0, %v39_v62 }
  0x11   :  { %v1788_v9 = vmul.f32 %v91_v3, %v59_v59  ;;  %v62_v12 = vld [vmem:[%s2280_s0 + $0xf0] sm:$0xff]  ;;  %v1799_v13 = vmul.f32 %v92_v10, %v60_v5  ;;  %v1801_v14 = vmul.f32 %v93_v11, %v61_v6  ;;  %v63_v15 = vld [vmem:[%s2280_s0 + $0xf8] sm:$0xff]  ;;  %v1423_v21 = vld [vmem:[%s2282_s4 + $0x40] sm:$0xff]  }
  0x12   :  { %1222 = vmatmul.mubr.msk.bf16.gmra.mrb[4].mxu0 %vm180_vm0, %v129_v24  ;;  %v94_v16 = vld [vmem:[%s2281_s1 + $0xf0] sm:$0xff]  ;;  %v95_v17 = vld [vmem:[%s2281_s1 + $0xf8] sm:$0xff]  ;;  %v1424_v23 = vld [vmem:[%s2282_s4] sm:$0xff]   ;;  %v102_v24 = vmul.f32 %v70_v63, %v38_v61  ;;  %1288 = vmatprep.subr.bf16.mxu0 %v1423_v21 }
  0x13   :  { %281 = vmatprep.mubr.bf16.mxu0 %v1567_v1  ;;  %v141_v18 = vpack.c.bf16 %v1788_v9, %v1778_v4  ;;  %v1814_v19 = vmul.f32 %v94_v16, %v62_v12  ;;  %v1816_v20 = vmul.f32 %v95_v17, %v63_v15  ;;  %v142_v22 = vpack.c.bf16 %v1801_v14, %v1799_v13  ;;  %v1425_v27 = vld [vmem:[%s2282_s4 + $0x48] sm:$0xff]   ;;  %v1427_v31 = vld [vmem:[%s2282_s4 + $0x50] sm:$0xff]   ;;  %v40_v32 = vld [vmem:[%s2280_s0 + $0x40] sm:$0xff] }
  0x14   :  { %1289 = vmatpush3.bf16.msra.mxu0 %v1424_v23  ;;  %v1426_v30 = vld [vmem:[%s2282_s4 + $0x8] sm:$0xff]   ;;  %1400 = vmatprep.subr.bf16.mxu1 %v1423_v21  ;;  %v72_v36 = vld [vmem:[%s2281_s1 + $0x40] sm:$0xff]  ;;  %v131_v37 = vpack.c.bf16 %v103_v25, %v102_v24  ;;  %v1428_v41 = vld [vmem:[%s2282_s4 + $0x10] sm:$0xff]  }
  0x15   :  { %v143_v26 = vpack.c.bf16 %v1816_v20, %v1814_v19  ;;  %1290 = vmatprep.subr.bf16.mxu0 %v1425_v27  ;;  %v41_v35 = vld [vmem:[%s2280_s0 + $0x48] sm:$0xff]  ;;  %1408 = vmatpush3.bf16.msra.mxu1 %v1424_v23  ;;  %v1429_v42 = vld [vmem:[%s2282_s4 + $0x58] sm:$0xff]   ;;  %v104_v43 = vmul.f32 %v72_v36, %v40_v32  ;;  %v1431_v48 = vld [vmem:[%s2282_s4 + $0x60] sm:$0xff]  }
  0x16   :  { %v73_v39 = vld [vmem:[%s2281_s1 + $0x48] sm:$0xff]  ;;  %1401 = vmatprep.subr.bf16.mxu1 %v1425_v27  ;;  %v1430_v47 = vld [vmem:[%s2282_s4 + $0x18] sm:$0xff]   ;;  %v42_v49 = vld [vmem:[%s2280_s0 + $0x50] sm:$0xff] }
  0x17   :  { %v105_v44 = vmul.f32 %v73_v39, %v41_v35  ;;  %v43_v53 = vld [vmem:[%s2280_s0 + $0x58] sm:$0xff]  ;;  %v74_v54 = vld [vmem:[%s2281_s1 + $0x50] sm:$0xff]  ;;  %v1432_v59 = vld [vmem:[%s2282_s4 + $0x20] sm:$0xff]  }
  0x18   :  { %1291 = vmatpush3.bf16.msra.mxu0 %v1426_v30  ;;  %v75_v58 = vld [vmem:[%s2281_s1 + $0x58] sm:$0xff]  ;;  %v1433_v60 = vld [vmem:[%s2282_s4 + $0x68] sm:$0xff]   ;;  %v106_v61 = vmul.f32 %v74_v54, %v42_v49  ;;  %v44_v0 = vld [vmem:[%s2280_s0 + $0x60] sm:$0xff] }
  0x19   :  { %1292 = vmatprep.subr.bf16.mxu0 %v1427_v31  ;;  %1409 = vmatpush3.bf16.msra.mxu1 %v1426_v30  ;;  %v132_v52 = vpack.c.bf16 %v105_v44, %v104_v43  ;;  %v107_v62 = vmul.f32 %v75_v58, %v43_v53  ;;  %v45_v3 = vld [vmem:[%s2280_s0 + $0x68] sm:$0xff]  ;;  %v76_v5 = vld [vmem:[%s2281_s1 + $0x60] sm:$0xff]  ;;  %v46_v12 = vld [vmem:[%s2280_s0 + $0x70] sm:$0xff] }
  0x1a   :  { %1223 = vmatmul.mubr.msk.bf16.gmra.mrb[8].mxu0 %vm180_vm0, %v130_v7  ;;  %1402 = vmatprep.subr.bf16.mxu1 %v1427_v31  ;;  %v77_v6 = vld [vmem:[%s2281_s1 + $0x68] sm:$0xff]  ;;  %v108_v7 = vmul.f32 %v76_v5, %v44_v0  ;;  %v47_v15 = vld [vmem:[%s2280_s0 + $0x78] sm:$0xff]  ;;  %v78_v16 = vld [vmem:[%s2281_s1 + $0x70] sm:$0xff] }
  0x1b   :  { %291 = vmatprep.mubr.bf16.mxu0 %v1567_v1  ;;  %v133_v63 = vpack.c.bf16 %v107_v62, %v106_v61  ;;  %v109_v10 = vmul.f32 %v77_v6, %v45_v3  ;;  %v79_v17 = vld [vmem:[%s2281_s1 + $0x78] sm:$0xff]  ;;  %v110_v21 = vmul.f32 %v78_v16, %v46_v12  ;;  %v1434_v28 = vld [vmem:[%s2282_s4 + $0x28] sm:$0xff]   ;;  %v1435_v29 = vld [vmem:[%s2282_s4 + $0x70] sm:$0xff]  }
  0x1c   :  { %1293 = vmatpush3.bf16.msra.mxu0 %v1428_v41  ;;  %v111_v23 = vmul.f32 %v79_v17, %v47_v15  ;;  %v1436_v33 = vld [vmem:[%s2282_s4 + $0x30] sm:$0xff]   ;;  %v1437_v34 = vld [vmem:[%s2282_s4 + $0x78] sm:$0xff]   ;;  %v148_v50 = vld [vmem:[%s2283_s3] sm:$0x3] }
  0x1d   :  { %1294 = vmatprep.subr.bf16.mxu0 %v1429_v42  ;;  %1410 = vmatpush3.bf16.msra.mxu1 %v1428_v41  ;;  %v134_v11 = vpack.c.bf16 %v109_v10, %v108_v7 }
  0x1e   :  { %1403 = vmatprep.subr.bf16.mxu1 %v1429_v42  ;;  %v135_v24 = vpack.c.bf16 %v111_v23, %v110_v21 }
  0x20   :  { %1295 = vmatpush3.bf16.msra.mxu0 %v1430_v47 }
  0x21   :  { %1296 = vmatprep.subr.bf16.mxu0 %v1431_v48  ;;  %1411 = vmatpush3.bf16.msra.mxu1 %v1430_v47 }
  0x22   :  { %1224 = vmatmul.mubr.msk.bf16.gmra.mrb[12].mxu0 %vm180_vm0, %v131_v37  ;;  %1404 = vmatprep.subr.bf16.mxu1 %v1431_v48 }
  0x23   :  { %301 = vmatprep.mubr.bf16.mxu0 %v1567_v1 }
  0x24   :  { %1297 = vmatpush3.bf16.msra.mxu0 %v1432_v59 }
  0x25   :  { %1298 = vmatprep.subr.bf16.mxu0 %v1433_v60  ;;  %1412 = vmatpush3.bf16.msra.mxu1 %v1432_v59 }
  0x26   :  { %1405 = vmatprep.subr.bf16.mxu1 %v1433_v60 }
  0x28   :  { %1299 = vmatpush3.bf16.msra.mxu0 %v1434_v28 }
  0x29   :  { %1413 = vmatpush3.bf16.msra.mxu1 %v1434_v28  ;;  %1300 = vmatprep.subr.bf16.mxu0 %v1435_v29 }
  0x2a   :  { %1225 = vmatmul.mubr.msk.bf16.gmra.mrb[16].mxu0 %vm180_vm0, %v132_v52  ;;  %1406 = vmatprep.subr.bf16.mxu1 %v1435_v29 }
  0x2b   :  { %311 = vmatprep.mubr.bf16.mxu0 %v1567_v1 }
  0x2c   :  { %1301 = vmatpush3.bf16.msra.mxu0 %v1436_v33 }
  0x2d   :  { %1414 = vmatpush3.bf16.msra.mxu1 %v1436_v33  ;;  %1302 = vmatprep.subr.bf16.mxu0 %v1437_v34 }
  0x2e   :  { %1407 = vmatprep.subr.bf16.mxu1 %v1437_v34 }
  0x32   :  { %1226 = vmatmul.mubr.msk.bf16.gmra.mrb[20].mxu0 %vm180_vm0, %v133_v63 }
  0x33   :  { %321 = vmatprep.mubr.bf16.mxu0 %v1567_v1 }
  0x3a   :  { %1227 = vmatmul.mubr.msk.bf16.gmra.mrb[24].mxu0 %vm180_vm0, %v134_v11 }
  0x3b   :  { %331 = vmatprep.mubr.bf16.mxu0 %v1567_v1 }
  0x42   :  { %1228 = vmatmul.mubr.msk.bf16.gmra.mrb[28].mxu0 %vm180_vm0, %v135_v24 }
  0x43   :  { %341 = vmatprep.mubr.bf16.mxu0 %v1567_v1 }
  0x4a   :  { %1229 = vmatmul.mubr.msk.bf16.gmra.mrb[32].mxu0 %vm180_vm0, %v136_v38  ;;  %v1438_v38 = vld [vmem:[%s2282_s4 + $0x38] sm:$0xff]  }
  0x4b   :  { %351 = vmatprep.mubr.bf16.mxu0 %v1567_v1  ;;  %1303 = vmatpush3.bf16.msra.mxu0 %v1438_v38 }
  0x4c   :  { %1415 = vmatpush3.bf16.msra.mxu1 %v1438_v38 }
  0x52   :  { %1230 = vmatmul.mubr.msk.bf16.gmra.mrb[36].mxu0 %vm180_vm0, %v137_v45  ;;  %v151_v45 = vshrl.u32 %v150_v40, 7 }
  0x53   :  { %361 = vmatprep.mubr.bf16.mxu0 %v1567_v1 }
  0x54   :  { %v152_v46 = vsub.s32 0, %v151_v45  ;;  %v156_v51 = vsub.s32 1, %v151_v45 }
  0x56   :  { %v1974_v56 = vrot.slane %v148_v50, %v156_v51 }
  0x5a   :  { %1231 = vmatmul.mubr.msk.bf16.gmra.mrb[40].mxu0 %vm180_vm0, %v138_v55  ;;  %v1972_v55 = vrot.slane %v148_v50, %v152_v46 }
  0x5b   :  { %371 = vmatprep.mubr.bf16.mxu0 %v1567_v1 }
  0x62   :  { %1232 = vmatmul.mubr.msk.bf16.gmra.mrb[44].mxu0 %vm180_vm0, %v139_v2 }
  0x63   :  { %381 = vmatprep.mubr.bf16.mxu0 %v1567_v1 }
  0x6a   :  { %1233 = vmatmul.mubr.msk.bf16.gmra.mrb[48].mxu0 %vm180_vm0, %v140_v8 }
  0x6b   :  { %391 = vmatprep.mubr.bf16.mxu0 %v1567_v1 }
  0x72   :  { %1234 = vmatmul.mubr.msk.bf16.gmra.mrb[52].mxu0 %vm180_vm0, %v141_v18 }
  0x73   :  { %401 = vmatprep.mubr.bf16.mxu0 %v1567_v1 }
  0x7a   :  { %1235 = vmatmul.mubr.msk.bf16.gmra.mrb[56].mxu0 %vm180_vm0, %v142_v22 }
  0x7b   :  { %411 = vmatprep.mubr.bf16.mxu0 %v1567_v1 }
  0x82   :  { %1236 = vmatmul.mubr.msk.bf16.gmra.mrb[60].mxu0 %vm180_vm0, %v143_v26 }
  0xdd   :  { %v263_v57 = vpop.f32.mrb[0].mxu0 }
  0xde   :  { %v264_v1 = vadd.f32 %v263_v57, %v1972_v55  ;;  %v265_v2 = vpop.f32.mrb[1].mxu0 }
  0xdf   :  { %v266_v4 = vadd.f32 %v265_v2, %v1974_v56  ;;  %v267_v8 = vpop.f32.mrb[2].mxu0 }
  0xe0   :  { %v268_v9 = vadd.f32 %v267_v8, %v1972_v55  ;;  %v269_v13 = vpop.f32.mrb[3].mxu0  ;;  %v422_v18 = vmax.f32 %v264_v1, 0.0 }
  0xe1   :  { %v270_v14 = vadd.f32 %v269_v13, %v1974_v56  ;;  %v423_v20 = vmax.f32 %v266_v4, 0.0 }
  0xe2   :  { %v424_v19 = vmax.f32 %v268_v9, 0.0 }
  0xe3   :  { %v425_v22 = vmax.f32 %v270_v14, 0.0 }
  0xe4   :  { %v486_v25 = vpack.c.bf16 %v424_v19, %v422_v18 }
  0xe5   :  { %v487_v26 = vpack.c.bf16 %v425_v22, %v423_v20  ;;  %v273_v27 = vpop.f32.mrb[4].mxu0 }
  0xe6   :  { %v274_v30 = vadd.f32 %v273_v27, %v1972_v55  ;;  %v275_v31 = vpop.f32.mrb[5].mxu0 }
  0xe7   :  { %v276_v32 = vadd.f32 %v275_v31, %v1974_v56  ;;  %v277_v35 = vpop.f32.mrb[6].mxu0  ;;  %685 = vmatprep.mubr.bf16.mxu0 %v487_v26 }
  0xe8   :  { %v278_v36 = vadd.f32 %v277_v35, %v1972_v55  ;;  %v279_v37 = vpop.f32.mrb[7].mxu0  ;;  %686 = vmatmul.mubr.bf16.vlgmr.msra.gmra.mrb[64].mxu0 %v486_v25  ;;  %v426_v41 = vmax.f32 %v274_v30, 0.0 }
  0xe9   :  { %v280_v39 = vadd.f32 %v279_v37, %v1974_v56  ;;  %v427_v43 = vmax.f32 %v276_v32, 0.0 }
  0xea   :  { %v428_v42 = vmax.f32 %v278_v36, 0.0 }
  0xeb   :  { %v429_v44 = vmax.f32 %v280_v39, 0.0 }
  0xec   :  { %v488_v47 = vpack.c.bf16 %v428_v42, %v426_v41 }
  0xed   :  { %v283_v48 = vpop.f32.mrb[8].mxu0  ;;  %v489_v49 = vpack.c.bf16 %v429_v44, %v427_v43 }
  0xee   :  { %v284_v52 = vadd.f32 %v283_v48, %v1972_v55  ;;  %v285_v53 = vpop.f32.mrb[9].mxu0 }
  0xef   :  { %v286_v54 = vadd.f32 %v285_v53, %v1974_v56  ;;  %v287_v58 = vpop.f32.mrb[10].mxu0  ;;  %693 = vmatprep.mubr.bf16.mxu1 %v489_v49 }
  0xf0   :  { %v288_v59 = vadd.f32 %v287_v58, %v1972_v55  ;;  %v289_v60 = vpop.f32.mrb[11].mxu0  ;;  %694 = vmatmul.mubr.bf16.vlgmr.msra.gmra.mrb[0].mxu1 %v488_v47  ;;  %v430_v62 = vmax.f32 %v284_v52, 0.0 }
  0xf1   :  { %v290_v61 = vadd.f32 %v289_v60, %v1974_v56  ;;  %v431_v0 = vmax.f32 %v286_v54, 0.0 }
  0xf2   :  { %v432_v63 = vmax.f32 %v288_v59, 0.0 }
  0xf3   :  { %v433_v3 = vmax.f32 %v290_v61, 0.0 }
  0xf4   :  { %v490_v5 = vpack.c.bf16 %v432_v63, %v430_v62 }
  0xf5   :  { %v491_v6 = vpack.c.bf16 %v433_v3, %v431_v0  ;;  %v293_v7 = vpop.f32.mrb[12].mxu0 }
  0xf6   :  { %v294_v10 = vadd.f32 %v293_v7, %v1972_v55  ;;  %v295_v11 = vpop.f32.mrb[13].mxu0 }
  0xf7   :  { %v296_v12 = vadd.f32 %v295_v11, %v1974_v56  ;;  %v297_v15 = vpop.f32.mrb[14].mxu0  ;;  %701 = vmatprep.mubr.bf16.mxu1 %v491_v6 }
  0xf8   :  { %v298_v16 = vadd.f32 %v297_v15, %v1972_v55  ;;  %v299_v17 = vpop.f32.mrb[15].mxu0  ;;  %702 = vmatmul.mubr.bf16.gmra.mrb[4].mxu1 %v490_v5  ;;  %v434_v23 = vmax.f32 %v294_v10, 0.0 }
  0xf9   :  { %v300_v21 = vadd.f32 %v299_v17, %v1974_v56  ;;  %v435_v28 = vmax.f32 %v296_v12, 0.0 }
  0xfa   :  { %v436_v24 = vmax.f32 %v298_v16, 0.0 }
  0xfb   :  { %v437_v29 = vmax.f32 %v300_v21, 0.0 }
  0xfc   :  { %v492_v33 = vpack.c.bf16 %v436_v24, %v434_v23 }
  0xfd   :  { %v493_v34 = vpack.c.bf16 %v437_v29, %v435_v28  ;;  %v303_v38 = vpop.f32.mrb[16].mxu0 }
  0xfe   :  { %v304_v40 = vadd.f32 %v303_v38, %v1972_v55  ;;  %v305_v45 = vpop.f32.mrb[17].mxu0 }
  0xff   :  { %v306_v46 = vadd.f32 %v305_v45, %v1974_v56  ;;  %v307_v50 = vpop.f32.mrb[18].mxu0  ;;  %709 = vmatprep.mubr.bf16.mxu1 %v493_v34 }
 0x100   :  { %v308_v51 = vadd.f32 %v307_v50, %v1972_v55  ;;  %v309_v57 = vpop.f32.mrb[19].mxu0  ;;  %710 = vmatmul.mubr.bf16.gmra.mrb[8].mxu1 %v492_v33  ;;  %v438_v2 = vmax.f32 %v304_v40, 0.0 }
 0x101   :  { %v310_v1 = vadd.f32 %v309_v57, %v1974_v56  ;;  %v439_v8 = vmax.f32 %v306_v46, 0.0 }
 0x102   :  { %v440_v4 = vmax.f32 %v308_v51, 0.0 }
 0x103   :  { %v441_v9 = vmax.f32 %v310_v1, 0.0 }
 0x104   :  { %v494_v13 = vpack.c.bf16 %v440_v4, %v438_v2 }
 0x105   :  { %v495_v14 = vpack.c.bf16 %v441_v9, %v439_v8  ;;  %v313_v18 = vpop.f32.mrb[20].mxu0 }
 0x106   :  { %v314_v19 = vadd.f32 %v313_v18, %v1972_v55  ;;  %v315_v20 = vpop.f32.mrb[21].mxu0 }
 0x107   :  { %v316_v22 = vadd.f32 %v315_v20, %v1974_v56  ;;  %v317_v25 = vpop.f32.mrb[22].mxu0  ;;  %717 = vmatprep.mubr.bf16.mxu1 %v495_v14 }
 0x108   :  { %v318_v26 = vadd.f32 %v317_v25, %v1972_v55  ;;  %v319_v27 = vpop.f32.mrb[23].mxu0  ;;  %718 = vmatmul.mubr.bf16.gmra.mrb[12].mxu1 %v494_v13  ;;  %v442_v31 = vmax.f32 %v314_v19, 0.0 }
 0x109   :  { %v320_v30 = vadd.f32 %v319_v27, %v1974_v56  ;;  %v443_v35 = vmax.f32 %v316_v22, 0.0 }
 0x10a   :  { %v444_v32 = vmax.f32 %v318_v26, 0.0 }
 0x10b   :  { %v445_v36 = vmax.f32 %v320_v30, 0.0 }
 0x10c   :  { %v496_v37 = vpack.c.bf16 %v444_v32, %v442_v31 }
 0x10d   :  { %v497_v39 = vpack.c.bf16 %v445_v36, %v443_v35  ;;  %v323_v41 = vpop.f32.mrb[24].mxu0 }
 0x10e   :  { %v324_v42 = vadd.f32 %v323_v41, %v1972_v55  ;;  %v325_v43 = vpop.f32.mrb[25].mxu0 }
 0x10f   :  { %v326_v44 = vadd.f32 %v325_v43, %v1974_v56  ;;  %v327_v47 = vpop.f32.mrb[26].mxu0  ;;  %725 = vmatprep.mubr.bf16.mxu1 %v497_v39 }
 0x110   :  { %v328_v48 = vadd.f32 %v327_v47, %v1972_v55  ;;  %v329_v49 = vpop.f32.mrb[27].mxu0  ;;  %726 = vmatmul.mubr.bf16.gmra.mrb[16].mxu1 %v496_v37  ;;  %v446_v53 = vmax.f32 %v324_v42, 0.0 }
 0x111   :  { %v330_v52 = vadd.f32 %v329_v49, %v1974_v56  ;;  %v447_v58 = vmax.f32 %v326_v44, 0.0 }
 0x112   :  { %v448_v54 = vmax.f32 %v328_v48, 0.0 }
 0x113   :  { %v449_v59 = vmax.f32 %v330_v52, 0.0 }
 0x114   :  { %v498_v60 = vpack.c.bf16 %v448_v54, %v446_v53 }
 0x115   :  { %v499_v61 = vpack.c.bf16 %v449_v59, %v447_v58  ;;  %v333_v62 = vpop.f32.mrb[28].mxu0 }
 0x116   :  { %v334_v63 = vadd.f32 %v333_v62, %v1972_v55  ;;  %v335_v0 = vpop.f32.mrb[29].mxu0 }
 0x117   :  { %v336_v3 = vadd.f32 %v335_v0, %v1974_v56  ;;  %v337_v5 = vpop.f32.mrb[30].mxu0  ;;  %733 = vmatprep.mubr.bf16.mxu1 %v499_v61 }
 0x118   :  { %v338_v6 = vadd.f32 %v337_v5, %v1972_v55  ;;  %v339_v7 = vpop.f32.mrb[31].mxu0  ;;  %734 = vmatmul.mubr.bf16.gmra.mrb[20].mxu1 %v498_v60  ;;  %v450_v11 = vmax.f32 %v334_v63, 0.0 }
 0x119   :  { %v340_v10 = vadd.f32 %v339_v7, %v1974_v56  ;;  %v451_v15 = vmax.f32 %v336_v3, 0.0 }
 0x11a   :  { %v452_v12 = vmax.f32 %v338_v6, 0.0 }
 0x11b   :  { %v453_v16 = vmax.f32 %v340_v10, 0.0 }
 0x11c   :  { %v500_v17 = vpack.c.bf16 %v452_v12, %v450_v11 }
 0x11d   :  { %v501_v21 = vpack.c.bf16 %v453_v16, %v451_v15  ;;  %v343_v23 = vpop.f32.mrb[32].mxu0 }
 0x11e   :  { %v344_v24 = vadd.f32 %v343_v23, %v1972_v55  ;;  %v345_v28 = vpop.f32.mrb[33].mxu0 }
 0x11f   :  { %v346_v29 = vadd.f32 %v345_v28, %v1974_v56  ;;  %v347_v33 = vpop.f32.mrb[34].mxu0  ;;  %741 = vmatprep.mubr.bf16.mxu1 %v501_v21 }
 0x120   :  { %v348_v34 = vadd.f32 %v347_v33, %v1972_v55  ;;  %v349_v38 = vpop.f32.mrb[35].mxu0  ;;  %742 = vmatmul.mubr.bf16.gmra.mrb[24].mxu1 %v500_v17  ;;  %v454_v45 = vmax.f32 %v344_v24, 0.0 }
 0x121   :  { %v350_v40 = vadd.f32 %v349_v38, %v1974_v56  ;;  %v455_v50 = vmax.f32 %v346_v29, 0.0 }
 0x122   :  { %v456_v46 = vmax.f32 %v348_v34, 0.0 }
 0x123   :  { %v457_v51 = vmax.f32 %v350_v40, 0.0 }
 0x124   :  { %v502_v57 = vpack.c.bf16 %v456_v46, %v454_v45 }
 0x125   :  { %v503_v1 = vpack.c.bf16 %v457_v51, %v455_v50  ;;  %v353_v2 = vpop.f32.mrb[36].mxu0 }
 0x126   :  { %v354_v4 = vadd.f32 %v353_v2, %v1972_v55  ;;  %v355_v8 = vpop.f32.mrb[37].mxu0 }
 0x127   :  { %v356_v9 = vadd.f32 %v355_v8, %v1974_v56  ;;  %v357_v13 = vpop.f32.mrb[38].mxu0  ;;  %749 = vmatprep.mubr.bf16.mxu1 %v503_v1 }
 0x128   :  { %v358_v14 = vadd.f32 %v357_v13, %v1972_v55  ;;  %v359_v18 = vpop.f32.mrb[39].mxu0  ;;  %750 = vmatmul.mubr.bf16.gmra.mrb[28].mxu1 %v502_v57  ;;  %v458_v20 = vmax.f32 %v354_v4, 0.0 }
 0x129   :  { %v360_v19 = vadd.f32 %v359_v18, %v1974_v56  ;;  %v459_v25 = vmax.f32 %v356_v9, 0.0 }
 0x12a   :  { %v460_v22 = vmax.f32 %v358_v14, 0.0 }
 0x12b   :  { %v461_v26 = vmax.f32 %v360_v19, 0.0 }
 0x12c   :  { %v504_v27 = vpack.c.bf16 %v460_v22, %v458_v20 }
 0x12d   :  { %v505_v30 = vpack.c.bf16 %v461_v26, %v459_v25  ;;  %v363_v31 = vpop.f32.mrb[40].mxu0 }
 0x12e   :  { %v364_v32 = vadd.f32 %v363_v31, %v1972_v55  ;;  %v365_v35 = vpop.f32.mrb[41].mxu0 }
 0x12f   :  { %v366_v36 = vadd.f32 %v365_v35, %v1974_v56  ;;  %v367_v37 = vpop.f32.mrb[42].mxu0  ;;  %757 = vmatprep.mubr.bf16.mxu1 %v505_v30 }
 0x130   :  { %v368_v39 = vadd.f32 %v367_v37, %v1972_v55  ;;  %v369_v41 = vpop.f32.mrb[43].mxu0  ;;  %758 = vmatmul.mubr.bf16.gmra.mrb[32].mxu1 %v504_v27  ;;  %v462_v43 = vmax.f32 %v364_v32, 0.0 }
 0x131   :  { %v370_v42 = vadd.f32 %v369_v41, %v1974_v56  ;;  %v463_v47 = vmax.f32 %v366_v36, 0.0 }
 0x132   :  { %v464_v44 = vmax.f32 %v368_v39, 0.0 }
 0x133   :  { %v465_v48 = vmax.f32 %v370_v42, 0.0 }
 0x134   :  { %v506_v49 = vpack.c.bf16 %v464_v44, %v462_v43 }
 0x135   :  { %v507_v52 = vpack.c.bf16 %v465_v48, %v463_v47  ;;  %v373_v53 = vpop.f32.mrb[44].mxu0 }
 0x136   :  { %v374_v54 = vadd.f32 %v373_v53, %v1972_v55  ;;  %v375_v58 = vpop.f32.mrb[45].mxu0 }
 0x137   :  { %v376_v59 = vadd.f32 %v375_v58, %v1974_v56  ;;  %v377_v60 = vpop.f32.mrb[46].mxu0  ;;  %765 = vmatprep.mubr.bf16.mxu1 %v507_v52 }
 0x138   :  { %v378_v61 = vadd.f32 %v377_v60, %v1972_v55  ;;  %v379_v62 = vpop.f32.mrb[47].mxu0  ;;  %766 = vmatmul.mubr.bf16.gmra.mrb[36].mxu1 %v506_v49  ;;  %v466_v0 = vmax.f32 %v374_v54, 0.0 }
 0x139   :  { %v380_v63 = vadd.f32 %v379_v62, %v1974_v56  ;;  %v467_v5 = vmax.f32 %v376_v59, 0.0 }
 0x13a   :  { %v468_v3 = vmax.f32 %v378_v61, 0.0 }
 0x13b   :  { %v469_v6 = vmax.f32 %v380_v63, 0.0 }
 0x13c   :  { %v508_v7 = vpack.c.bf16 %v468_v3, %v466_v0 }
 0x13d   :  { %v509_v10 = vpack.c.bf16 %v469_v6, %v467_v5  ;;  %v383_v11 = vpop.f32.mrb[48].mxu0  ;;  %v2043_v5 = vld [vmem:[%s2284_s5] ss:$0 sm:$0xff] }
 0x13e   :  { %v384_v12 = vadd.f32 %v383_v11, %v1972_v55  ;;  %v385_v15 = vpop.f32.mrb[49].mxu0  ;;  %v2049_v11 = vld [vmem:[%s2285_s6] ss:$0 sm:$0xff] }
 0x13f   :  { %v386_v16 = vadd.f32 %v385_v15, %v1974_v56  ;;  %v387_v17 = vpop.f32.mrb[50].mxu0  ;;  %773 = vmatprep.mubr.bf16.mxu1 %v509_v10 }
 0x140   :  { %v388_v21 = vadd.f32 %v387_v17, %v1972_v55  ;;  %v389_v23 = vpop.f32.mrb[51].mxu0  ;;  %774 = vmatmul.mubr.bf16.gmra.mrb[40].mxu1 %v508_v7  ;;  %v470_v28 = vmax.f32 %v384_v12, 0.0  ;;  %v13_v12 = vstv %s2286_s7 }
 0x141   :  { %v390_v24 = vadd.f32 %v389_v23, %v1974_v56  ;;  %v471_v33 = vmax.f32 %v386_v16, 0.0  ;;  %14 = vst [vmem:[#allocation2] sm:$0x1] %v13_v12 }
 0x142   :  { %v472_v29 = vmax.f32 %v388_v21, 0.0 }
 0x143   :  { %v473_v34 = vmax.f32 %v390_v24, 0.0 }
 0x144   :  { %v510_v38 = vpack.c.bf16 %v472_v29, %v470_v28 }
 0x145   :  { %v511_v40 = vpack.c.bf16 %v473_v34, %v471_v33  ;;  %v393_v45 = vpop.f32.mrb[52].mxu0 }
 0x146   :  { %v394_v46 = vadd.f32 %v393_v45, %v1972_v55  ;;  %v395_v50 = vpop.f32.mrb[53].mxu0 }
 0x147   :  { %v396_v51 = vadd.f32 %v395_v50, %v1974_v56  ;;  %v397_v57 = vpop.f32.mrb[54].mxu0  ;;  %781 = vmatprep.mubr.bf16.mxu1 %v511_v40 }
 0x148   :  { %v398_v1 = vadd.f32 %v397_v57, %v1972_v55  ;;  %v399_v2 = vpop.f32.mrb[55].mxu0  ;;  %782 = vmatmul.mubr.bf16.gmra.mrb[44].mxu1 %v510_v38  ;;  %v474_v8 = vmax.f32 %v394_v46, 0.0 }
 0x149   :  { %v400_v4 = vadd.f32 %v399_v2, %v1974_v56  ;;  %v475_v13 = vmax.f32 %v396_v51, 0.0 }
 0x14a   :  { %v476_v9 = vmax.f32 %v398_v1, 0.0 }
 0x14b   :  { %v477_v14 = vmax.f32 %v400_v4, 0.0 }
 0x14c   :  { %v512_v18 = vpack.c.bf16 %v476_v9, %v474_v8 }
 0x14d   :  { %v513_v19 = vpack.c.bf16 %v477_v14, %v475_v13  ;;  %v403_v20 = vpop.f32.mrb[56].mxu0 }
 0x14e   :  { %v404_v22 = vadd.f32 %v403_v20, %v1972_v55  ;;  %v405_v25 = vpop.f32.mrb[57].mxu0 }
 0x14f   :  { %v406_v26 = vadd.f32 %v405_v25, %v1974_v56  ;;  %v407_v27 = vpop.f32.mrb[58].mxu0  ;;  %789 = vmatprep.mubr.bf16.mxu1 %v513_v19 }
 0x150   :  { %v408_v30 = vadd.f32 %v407_v27, %v1972_v55  ;;  %v409_v31 = vpop.f32.mrb[59].mxu0  ;;  %790 = vmatmul.mubr.bf16.gmra.mrb[48].mxu1 %v512_v18  ;;  %v478_v35 = vmax.f32 %v404_v22, 0.0 }
 0x151   :  { %v410_v32 = vadd.f32 %v409_v31, %v1974_v56  ;;  %v479_v37 = vmax.f32 %v406_v26, 0.0 }
 0x152   :  { %v480_v36 = vmax.f32 %v408_v30, 0.0 }
 0x153   :  { %v481_v39 = vmax.f32 %v410_v32, 0.0 }
 0x154   :  { %v514_v41 = vpack.c.bf16 %v480_v36, %v478_v35 }
 0x155   :  { %v515_v42 = vpack.c.bf16 %v481_v39, %v479_v37  ;;  %v413_v43 = vpop.f32.mrb[60].mxu0 }
 0x156   :  { %v414_v44 = vadd.f32 %v413_v43, %v1972_v55  ;;  %v415_v47 = vpop.f32.mrb[61].mxu0 }
 0x157   :  { %v416_v48 = vadd.f32 %v415_v47, %v1974_v56  ;;  %v417_v49 = vpop.f32.mrb[62].mxu0  ;;  %797 = vmatprep.mubr.bf16.mxu1 %v515_v42 }
 0x158   :  { %v418_v52 = vadd.f32 %v417_v49, %v1972_v55  ;;  %v419_v53 = vpop.f32.mrb[63].mxu0  ;;  %798 = vmatmul.mubr.bf16.gmra.mrb[52].mxu1 %v514_v41  ;;  %v482_v58 = vmax.f32 %v414_v44, 0.0 }
 0x159   :  { %v420_v54 = vadd.f32 %v419_v53, %v1974_v56  ;;  %v483_v60 = vmax.f32 %v416_v48, 0.0 }
 0x15a   :  { %v484_v59 = vmax.f32 %v418_v52, 0.0 }
 0x15b   :  { %v485_v61 = vmax.f32 %v420_v54, 0.0 }
 0x15c   :  { %v516_v62 = vpack.c.bf16 %v484_v59, %v482_v58 }
 0x15d   :  { %v517_v63 = vpack.c.bf16 %v485_v61, %v483_v60 }
 0x15f   :  { %805 = vmatprep.mubr.bf16.mxu1 %v517_v63 }
 0x160   :  { %806 = vmatmul.mubr.bf16.gmra.mrb[56].mxu1 %v516_v62 }
 0x1bb   :  { %v1304_v0 = vpop.f32.mrb[64].mxu0 }
 0x1bc   :  { %v1305_v3 = vpop.f32.mrb[65].mxu0 }
 0x1bd   :  { %v1306_v55 = vadd.f32 %v1305_v3, %v1304_v0  ;;  %v1307_v6 = vpop.f32.mrb[66].mxu0 }
 0x1be   :  { %v1308_v7 = vpop.f32.mrb[67].mxu0 }
 0x1bf   :  { %v1309_v10 = vadd.f32 %v1308_v7, %v1307_v6  ;;  %v688_v56 = vadd.f32 %v1306_v55, %v2043_v5 }
 0x1c1   :  { %v691_v15 = vadd.f32 %v1309_v10, %v2043_v5  ;;  %v814_v16 = vmax.f32 %v688_v56, 0.0 }
 0x1c3   :  { %v815_v17 = vmax.f32 %v691_v15, 0.0  ;;  %v1310_v21 = vpop.f32.mrb[0].mxu1  ;;  %v853_v23 = vmul.f32 %v2049_v11, %v814_v16 }
 0x1c4   :  { %v1311_v24 = vpop.f32.mrb[1].mxu1 }
 0x1c5   :  { %v1312_v28 = vadd.f32 %v1311_v24, %v1310_v21  ;;  %v1313_v29 = vpop.f32.mrb[2].mxu1  ;;  %885 = vadd.xlane.f32.xlu0 %v853_v23  ;;  %v854_v38 = vmul.f32 %v2049_v11, %v815_v17 }
 0x1c6   :  { %v1314_v33 = vpop.f32.mrb[3].mxu1 }
 0x1c7   :  { %v1315_v34 = vadd.f32 %v1314_v33, %v1313_v29  ;;  %v696_v40 = vadd.f32 %v1312_v28, %v2043_v5 }
 0x1c9   :  { %v699_v45 = vadd.f32 %v1315_v34, %v2043_v5  ;;  %887 = vadd.xlane.f32.xlu0 %v854_v38  ;;  %v816_v46 = vmax.f32 %v696_v40, 0.0 }
 0x1cb   :  { %v817_v50 = vmax.f32 %v699_v45, 0.0  ;;  %v1316_v51 = vpop.f32.mrb[4].mxu1  ;;  %v855_v57 = vmul.f32 %v2049_v11, %v816_v46 }
 0x1cc   :  { %v1317_v1 = vpop.f32.mrb[5].mxu1 }
 0x1cd   :  { %v1318_v2 = vadd.f32 %v1317_v1, %v1316_v51  ;;  %v1319_v4 = vpop.f32.mrb[6].mxu1  ;;  %889 = vadd.xlane.f32.xlu1 %v855_v57  ;;  %v856_v14 = vmul.f32 %v2049_v11, %v817_v50 }
 0x1ce   :  { %v1320_v8 = vpop.f32.mrb[7].mxu1 }
 0x1cf   :  { %v704_v9 = vadd.f32 %v1318_v2, %v2043_v5  ;;  %v1321_v13 = vadd.f32 %v1320_v8, %v1319_v4 }
 0x1d1   :  { %v818_v18 = vmax.f32 %v704_v9, 0.0  ;;  %v707_v19 = vadd.f32 %v1321_v13, %v2043_v5  ;;  %891 = vadd.xlane.f32.xlu1 %v856_v14 }
 0x1d3   :  { %v819_v20 = vmax.f32 %v707_v19, 0.0  ;;  %v1322_v22 = vpop.f32.mrb[8].mxu1  ;;  %v857_v25 = vmul.f32 %v2049_v11, %v818_v18 }
 0x1d4   :  { %v1323_v26 = vpop.f32.mrb[9].mxu1 }
 0x1d5   :  { %v1324_v27 = vadd.f32 %v1323_v26, %v1322_v22  ;;  %v1325_v30 = vpop.f32.mrb[10].mxu1  ;;  %893 = vadd.xlane.f32.xlu0 %v857_v25  ;;  %v858_v31 = vmul.f32 %v2049_v11, %v819_v20 }
 0x1d6   :  { %v1326_v32 = vpop.f32.mrb[11].mxu1 }
 0x1d7   :  { %v712_v35 = vadd.f32 %v1324_v27, %v2043_v5  ;;  %v1327_v36 = vadd.f32 %v1326_v32, %v1325_v30  ;;  %895 = vadd.xlane.f32.xlu1 %v858_v31 }
 0x1d9   :  { %v820_v37 = vmax.f32 %v712_v35, 0.0  ;;  %v715_v39 = vadd.f32 %v1327_v36, %v2043_v5 }
 0x1db   :  { %v821_v41 = vmax.f32 %v715_v39, 0.0  ;;  %v1328_v42 = vpop.f32.mrb[12].mxu1  ;;  %v859_v43 = vmul.f32 %v2049_v11, %v820_v37 }
 0x1dc   :  { %v1329_v44 = vpop.f32.mrb[13].mxu1 }
 0x1dd   :  { %v1330_v47 = vadd.f32 %v1329_v44, %v1328_v42  ;;  %v1331_v48 = vpop.f32.mrb[14].mxu1  ;;  %897 = vadd.xlane.f32.xlu0 %v859_v43  ;;  %v860_v49 = vmul.f32 %v2049_v11, %v821_v41 }
 0x1de   :  { %v1332_v52 = vpop.f32.mrb[15].mxu1 }
 0x1df   :  { %v720_v53 = vadd.f32 %v1330_v47, %v2043_v5  ;;  %v1333_v54 = vadd.f32 %v1332_v52, %v1331_v48  ;;  %899 = vadd.xlane.f32.xlu1 %v860_v49 }
 0x1e1   :  { %v822_v58 = vmax.f32 %v720_v53, 0.0  ;;  %v723_v59 = vadd.f32 %v1333_v54, %v2043_v5 }
 0x1e3   :  { %v823_v60 = vmax.f32 %v723_v59, 0.0  ;;  %v1334_v61 = vpop.f32.mrb[16].mxu1  ;;  %v861_v62 = vmul.f32 %v2049_v11, %v822_v58 }
 0x1e4   :  { %v1335_v63 = vpop.f32.mrb[17].mxu1 }
 0x1e5   :  { %v1336_v0 = vadd.f32 %v1335_v63, %v1334_v61  ;;  %v1337_v3 = vpop.f32.mrb[18].mxu1  ;;  %901 = vadd.xlane.f32.xlu0 %v861_v62  ;;  %v862_v55 = vmul.f32 %v2049_v11, %v823_v60 }
 0x1e6   :  { %v1338_v6 = vpop.f32.mrb[19].mxu1 }
 0x1e7   :  { %v728_v7 = vadd.f32 %v1336_v0, %v2043_v5  ;;  %v1339_v10 = vadd.f32 %v1338_v6, %v1337_v3  ;;  %903 = vadd.xlane.f32.xlu1 %v862_v55 }
 0x1e9   :  { %v824_v56 = vmax.f32 %v728_v7, 0.0  ;;  %v731_v12 = vadd.f32 %v1339_v10, %v2043_v5 }
 0x1eb   :  { %v825_v15 = vmax.f32 %v731_v12, 0.0  ;;  %v1340_v16 = vpop.f32.mrb[20].mxu1  ;;  %v863_v17 = vmul.f32 %v2049_v11, %v824_v56 }
 0x1ec   :  { %v1341_v21 = vpop.f32.mrb[21].mxu1 }
 0x1ed   :  { %v1342_v23 = vadd.f32 %v1341_v21, %v1340_v16  ;;  %v1343_v24 = vpop.f32.mrb[22].mxu1  ;;  %905 = vadd.xlane.f32.xlu0 %v863_v17  ;;  %v864_v28 = vmul.f32 %v2049_v11, %v825_v15 }
 0x1ee   :  { %v1344_v29 = vpop.f32.mrb[23].mxu1 }
 0x1ef   :  { %v736_v33 = vadd.f32 %v1342_v23, %v2043_v5  ;;  %v1345_v34 = vadd.f32 %v1344_v29, %v1343_v24  ;;  %907 = vadd.xlane.f32.xlu1 %v864_v28 }
 0x1f1   :  { %v826_v38 = vmax.f32 %v736_v33, 0.0  ;;  %v739_v40 = vadd.f32 %v1345_v34, %v2043_v5 }
 0x1f3   :  { %v827_v45 = vmax.f32 %v739_v40, 0.0  ;;  %v1346_v46 = vpop.f32.mrb[24].mxu1  ;;  %v865_v50 = vmul.f32 %v2049_v11, %v826_v38 }
 0x1f4   :  { %v1347_v51 = vpop.f32.mrb[25].mxu1 }
 0x1f5   :  { %v1348_v57 = vadd.f32 %v1347_v51, %v1346_v46  ;;  %v1349_v1 = vpop.f32.mrb[26].mxu1  ;;  %909 = vadd.xlane.f32.xlu0 %v865_v50  ;;  %v866_v2 = vmul.f32 %v2049_v11, %v827_v45 }
 0x1f6   :  { %v1350_v4 = vpop.f32.mrb[27].mxu1 }
 0x1f7   :  { %v744_v8 = vadd.f32 %v1348_v57, %v2043_v5  ;;  %v1351_v9 = vadd.f32 %v1350_v4, %v1349_v1  ;;  %911 = vadd.xlane.f32.xlu1 %v866_v2 }
 0x1f9   :  { %v828_v13 = vmax.f32 %v744_v8, 0.0  ;;  %v747_v14 = vadd.f32 %v1351_v9, %v2043_v5 }
 0x1fb   :  { %v829_v18 = vmax.f32 %v747_v14, 0.0  ;;  %v1352_v19 = vpop.f32.mrb[28].mxu1  ;;  %v867_v20 = vmul.f32 %v2049_v11, %v828_v13 }
 0x1fc   :  { %v1353_v22 = vpop.f32.mrb[29].mxu1 }
 0x1fd   :  { %v1354_v25 = vadd.f32 %v1353_v22, %v1352_v19  ;;  %v1355_v26 = vpop.f32.mrb[30].mxu1  ;;  %913 = vadd.xlane.f32.xlu0 %v867_v20  ;;  %v868_v27 = vmul.f32 %v2049_v11, %v829_v18 }
 0x1fe   :  { %v1356_v30 = vpop.f32.mrb[31].mxu1 }
 0x1ff   :  { %v752_v31 = vadd.f32 %v1354_v25, %v2043_v5  ;;  %v1357_v32 = vadd.f32 %v1356_v30, %v1355_v26  ;;  %915 = vadd.xlane.f32.xlu1 %v868_v27 }
 0x201   :  { %v830_v35 = vmax.f32 %v752_v31, 0.0  ;;  %v755_v36 = vadd.f32 %v1357_v32, %v2043_v5 }
 0x203   :  { %v831_v37 = vmax.f32 %v755_v36, 0.0  ;;  %v1358_v39 = vpop.f32.mrb[32].mxu1  ;;  %v869_v41 = vmul.f32 %v2049_v11, %v830_v35 }
 0x204   :  { %v1359_v42 = vpop.f32.mrb[33].mxu1 }
 0x205   :  { %v1360_v43 = vadd.f32 %v1359_v42, %v1358_v39  ;;  %v1361_v44 = vpop.f32.mrb[34].mxu1  ;;  %917 = vadd.xlane.f32.xlu0 %v869_v41  ;;  %v870_v47 = vmul.f32 %v2049_v11, %v831_v37 }
 0x206   :  { %v1362_v48 = vpop.f32.mrb[35].mxu1 }
 0x207   :  { %v760_v49 = vadd.f32 %v1360_v43, %v2043_v5  ;;  %v1363_v52 = vadd.f32 %v1362_v48, %v1361_v44  ;;  %919 = vadd.xlane.f32.xlu1 %v870_v47 }
 0x209   :  { %v832_v53 = vmax.f32 %v760_v49, 0.0  ;;  %v763_v54 = vadd.f32 %v1363_v52, %v2043_v5 }
 0x20b   :  { %v833_v58 = vmax.f32 %v763_v54, 0.0  ;;  %v1364_v59 = vpop.f32.mrb[36].mxu1  ;;  %v871_v60 = vmul.f32 %v2049_v11, %v832_v53 }
 0x20c   :  { %v1365_v61 = vpop.f32.mrb[37].mxu1 }
 0x20d   :  { %v1366_v62 = vadd.f32 %v1365_v61, %v1364_v59  ;;  %v1367_v63 = vpop.f32.mrb[38].mxu1  ;;  %921 = vadd.xlane.f32.xlu0 %v871_v60  ;;  %v872_v0 = vmul.f32 %v2049_v11, %v833_v58 }
 0x20e   :  { %v1368_v3 = vpop.f32.mrb[39].mxu1 }
 0x20f   :  { %v768_v55 = vadd.f32 %v1366_v62, %v2043_v5  ;;  %v1369_v6 = vadd.f32 %v1368_v3, %v1367_v63  ;;  %923 = vadd.xlane.f32.xlu1 %v872_v0 }
 0x211   :  { %v834_v7 = vmax.f32 %v768_v55, 0.0  ;;  %v771_v10 = vadd.f32 %v1369_v6, %v2043_v5 }
 0x213   :  { %v835_v56 = vmax.f32 %v771_v10, 0.0  ;;  %v1370_v12 = vpop.f32.mrb[40].mxu1  ;;  %v873_v15 = vmul.f32 %v2049_v11, %v834_v7 }
 0x214   :  { %v1371_v16 = vpop.f32.mrb[41].mxu1 }
 0x215   :  { %v1372_v17 = vadd.f32 %v1371_v16, %v1370_v12  ;;  %v1373_v21 = vpop.f32.mrb[42].mxu1  ;;  %925 = vadd.xlane.f32.xlu0 %v873_v15  ;;  %v874_v23 = vmul.f32 %v2049_v11, %v835_v56  ;;  %v2117_v12 = vld [vmem:[#allocation2] ss:$0 sm:$0xff] }
 0x216   :  { %v1374_v24 = vpop.f32.mrb[43].mxu1 }
 0x217   :  { %v776_v28 = vadd.f32 %v1372_v17, %v2043_v5  ;;  %v1375_v29 = vadd.f32 %v1374_v24, %v1373_v21  ;;  %927 = vadd.xlane.f32.xlu1 %v874_v23 }
 0x219   :  { %v836_v33 = vmax.f32 %v776_v28, 0.0  ;;  %v779_v34 = vadd.f32 %v1375_v29, %v2043_v5 }
 0x21b   :  { %v837_v38 = vmax.f32 %v779_v34, 0.0  ;;  %v1376_v40 = vpop.f32.mrb[44].mxu1  ;;  %v875_v45 = vmul.f32 %v2049_v11, %v836_v33 }
 0x21c   :  { %v1377_v46 = vpop.f32.mrb[45].mxu1 }
 0x21d   :  { %v1378_v50 = vadd.f32 %v1377_v46, %v1376_v40  ;;  %v1379_v51 = vpop.f32.mrb[46].mxu1  ;;  %929 = vadd.xlane.f32.xlu0 %v875_v45  ;;  %v876_v57 = vmul.f32 %v2049_v11, %v837_v38 }
 0x21e   :  { %v1380_v1 = vpop.f32.mrb[47].mxu1 }
 0x21f   :  { %v784_v2 = vadd.f32 %v1378_v50, %v2043_v5  ;;  %v1381_v4 = vadd.f32 %v1380_v1, %v1379_v51  ;;  %931 = vadd.xlane.f32.xlu1 %v876_v57 }
 0x221   :  { %v838_v8 = vmax.f32 %v784_v2, 0.0  ;;  %v787_v9 = vadd.f32 %v1381_v4, %v2043_v5 }
 0x223   :  { %v839_v13 = vmax.f32 %v787_v9, 0.0  ;;  %v1382_v14 = vpop.f32.mrb[48].mxu1  ;;  %v877_v18 = vmul.f32 %v2049_v11, %v838_v8 }
 0x224   :  { %v1383_v19 = vpop.f32.mrb[49].mxu1 }
 0x225   :  { %v1384_v20 = vadd.f32 %v1383_v19, %v1382_v14  ;;  %v1385_v22 = vpop.f32.mrb[50].mxu1  ;;  %933 = vadd.xlane.f32.xlu0 %v877_v18  ;;  %v878_v25 = vmul.f32 %v2049_v11, %v839_v13 }
 0x226   :  { %v1386_v26 = vpop.f32.mrb[51].mxu1 }
 0x227   :  { %v792_v27 = vadd.f32 %v1384_v20, %v2043_v5  ;;  %v1387_v30 = vadd.f32 %v1386_v26, %v1385_v22  ;;  %935 = vadd.xlane.f32.xlu1 %v878_v25 }
 0x229   :  { %v840_v31 = vmax.f32 %v792_v27, 0.0  ;;  %v795_v32 = vadd.f32 %v1387_v30, %v2043_v5 }
 0x22b   :  { %v841_v35 = vmax.f32 %v795_v32, 0.0  ;;  %v1388_v36 = vpop.f32.mrb[52].mxu1  ;;  %v879_v37 = vmul.f32 %v2049_v11, %v840_v31 }
 0x22c   :  { %v1389_v39 = vpop.f32.mrb[53].mxu1 }
 0x22d   :  { %v1390_v41 = vadd.f32 %v1389_v39, %v1388_v36  ;;  %v1391_v42 = vpop.f32.mrb[54].mxu1  ;;  %937 = vadd.xlane.f32.xlu0 %v879_v37  ;;  %v880_v43 = vmul.f32 %v2049_v11, %v841_v35 }
 0x22e   :  { %v1392_v44 = vpop.f32.mrb[55].mxu1 }
 0x22f   :  { %v800_v47 = vadd.f32 %v1390_v41, %v2043_v5  ;;  %v1393_v48 = vadd.f32 %v1392_v44, %v1391_v42  ;;  %939 = vadd.xlane.f32.xlu1 %v880_v43 }
 0x231   :  { %v842_v49 = vmax.f32 %v800_v47, 0.0  ;;  %v803_v52 = vadd.f32 %v1393_v48, %v2043_v5 }
 0x233   :  { %v843_v53 = vmax.f32 %v803_v52, 0.0  ;;  %v1394_v54 = vpop.f32.mrb[56].mxu1  ;;  %v881_v58 = vmul.f32 %v2049_v11, %v842_v49 }
 0x234   :  { %v1395_v59 = vpop.f32.mrb[57].mxu1 }
 0x235   :  { %v1396_v60 = vadd.f32 %v1395_v59, %v1394_v54  ;;  %v1397_v61 = vpop.f32.mrb[58].mxu1  ;;  %941 = vadd.xlane.f32.xlu0 %v881_v58  ;;  %v882_v62 = vmul.f32 %v2049_v11, %v843_v53 }
 0x236   :  { %v1398_v63 = vpop.f32.mrb[59].mxu1 }
 0x237   :  { %v808_v0 = vadd.f32 %v1396_v60, %v2043_v5  ;;  %v1399_v3 = vadd.f32 %v1398_v63, %v1397_v61  ;;  %943 = vadd.xlane.f32.xlu1 %v882_v62 }
 0x239   :  { %v844_v55 = vmax.f32 %v808_v0, 0.0  ;;  %v811_v6 = vadd.f32 %v1399_v3, %v2043_v5 }
 0x23b   :  { %v845_v7 = vmax.f32 %v811_v6, 0.0  ;;  %v883_v10 = vmul.f32 %v2049_v11, %v844_v55 }
 0x23d   :  { %945 = vadd.xlane.f32.xlu0 %v883_v10  ;;  %v884_v56 = vmul.f32 %v2049_v11, %v845_v7 }
 0x23f   :  { %947 = vadd.xlane.f32.xlu1 %v884_v56 }
 0x252   :  { %v886_v15 = vpop.xlane.xlu0 %885 }
 0x253   :  { %v956_v16 = vadd.f32 %v2117_v12, %v886_v15 }
 0x255   :  { %v1256_v17 = vmul.f32 -1.442695, %v956_v16 }
 0x256   :  { %v888_v21 = vpop.xlane.xlu0 %887 }
 0x257   :  { %1439 = vpow2.f32 %v1256_v17  ;;  %v957_v23 = vadd.f32 %v2117_v12, %v888_v21 }
 0x259   :  { %v1257_v24 = vmul.f32 -1.442695, %v957_v23 }
 0x25a   :  { %v890_v28 = vpop.xlane.xlu1 %889 }
 0x25b   :  { %1441 = vpow2.f32 %v1257_v24  ;;  %v958_v5 = vadd.f32 %v2117_v12, %v890_v28 }
 0x25d   :  { %v1258_v29 = vmul.f32 -1.442695, %v958_v5 }
 0x25e   :  { %v892_v33 = vpop.xlane.xlu1 %891 }
 0x25f   :  { %1443 = vpow2.f32 %v1258_v29  ;;  %v959_v11 = vadd.f32 %v2117_v12, %v892_v33 }
 0x261   :  { %v1440_v34 = vpop.eup %1439  ;;  %v1259_v38 = vmul.f32 -1.442695, %v959_v11 }
 0x262   :  { %v1084_v40 = vadd.f32 1.0, %v1440_v34  ;;  %v894_v45 = vpop.xlane.xlu0 %893 }
 0x263   :  { %1445 = vpow2.f32 %v1259_v38  ;;  %v960_v46 = vadd.f32 %v2117_v12, %v894_v45 }
 0x264   :  { %1447 = vrcp.f32 %v1084_v40  ;;  %v896_v50 = vpop.xlane.xlu1 %895 }
 0x265   :  { %v1442_v51 = vpop.eup %1441  ;;  %v1260_v57 = vmul.f32 -1.442695, %v960_v46  ;;  %v961_v1 = vadd.f32 %v2117_v12, %v896_v50 }
 0x266   :  { %v1085_v2 = vadd.f32 1.0, %v1442_v51 }
 0x267   :  { %1449 = vpow2.f32 %v1260_v57  ;;  %v1261_v4 = vmul.f32 -1.442695, %v961_v1 }
 0x268   :  { %1451 = vrcp.f32 %v1085_v2 }
 0x269   :  { %v1444_v8 = vpop.eup %1443  ;;  %1453 = vpow2.f32 %v1261_v4 }
 0x26a   :  { %v1086_v9 = vadd.f32 1.0, %v1444_v8  ;;  %v898_v13 = vpop.xlane.xlu0 %897 }
 0x26b   :  { %v962_v14 = vadd.f32 %v2117_v12, %v898_v13 }
 0x26c   :  { %1455 = vrcp.f32 %v1086_v9  ;;  %v900_v18 = vpop.xlane.xlu1 %899 }
 0x26d   :  { %v1446_v19 = vpop.eup %1445  ;;  %v1262_v20 = vmul.f32 -1.442695, %v962_v14  ;;  %v963_v22 = vadd.f32 %v2117_v12, %v900_v18 }
 0x26e   :  { %v1448_v25 = vpop.eup %1447  ;;  %v1087_v26 = vadd.f32 1.0, %v1446_v19 }
 0x26f   :  { %1181 = vst.msk [vmem:[%s2287_s8] sm:$0xff] %vm1180_vm1, %v1448_v25  ;;  %1457 = vpow2.f32 %v1262_v20  ;;  %v1263_v27 = vmul.f32 -1.442695, %v963_v22 }
 0x270   :  { %1459 = vrcp.f32 %v1087_v26 }
 0x271   :  { %v1450_v30 = vpop.eup %1449  ;;  %1461 = vpow2.f32 %v1263_v27 }
 0x272   :  { %v1452_v31 = vpop.eup %1451  ;;  %v1088_v32 = vadd.f32 1.0, %v1450_v30  ;;  %v902_v35 = vpop.xlane.xlu0 %901 }
 0x273   :  { %v1454_v36 = vpop.eup %1453  ;;  %1182 = vst.msk [vmem:[%s2287_s8 + $0x8] sm:$0xff] %vm1180_vm1, %v1452_v31  ;;  %v964_v37 = vadd.f32 %v2117_v12, %v902_v35 }
 0x274   :  { %1463 = vrcp.f32 %v1088_v32  ;;  %v1089_v39 = vadd.f32 1.0, %v1454_v36  ;;  %v904_v41 = vpop.xlane.xlu1 %903 }
 0x275   :  { %v1264_v42 = vmul.f32 -1.442695, %v964_v37  ;;  %v965_v43 = vadd.f32 %v2117_v12, %v904_v41 }
 0x276   :  { %v1456_v44 = vpop.eup %1455  ;;  %1465 = vrcp.f32 %v1089_v39 }
 0x277   :  { %1183 = vst.msk [vmem:[%s2287_s8 + $0x10] sm:$0xff] %vm1180_vm1, %v1456_v44  ;;  %1467 = vpow2.f32 %v1264_v42  ;;  %v1265_v47 = vmul.f32 -1.442695, %v965_v43 }
 0x279   :  { %v1458_v48 = vpop.eup %1457  ;;  %1469 = vpow2.f32 %v1265_v47 }
 0x27a   :  { %v1460_v49 = vpop.eup %1459  ;;  %v1090_v52 = vadd.f32 1.0, %v1458_v48  ;;  %v906_v53 = vpop.xlane.xlu0 %905 }
 0x27b   :  { %v1462_v54 = vpop.eup %1461  ;;  %1184 = vst.msk [vmem:[%s2287_s8 + $0x18] sm:$0xff] %vm1180_vm1, %v1460_v49  ;;  %v966_v58 = vadd.f32 %v2117_v12, %v906_v53 }
 0x27c   :  { %1471 = vrcp.f32 %v1090_v52  ;;  %v1091_v59 = vadd.f32 1.0, %v1462_v54  ;;  %v908_v60 = vpop.xlane.xlu1 %907 }
 0x27d   :  { %v1266_v61 = vmul.f32 -1.442695, %v966_v58  ;;  %v967_v62 = vadd.f32 %v2117_v12, %v908_v60 }
 0x27e   :  { %v1464_v63 = vpop.eup %1463  ;;  %1473 = vrcp.f32 %v1091_v59 }
 0x27f   :  { %1185 = vst.msk [vmem:[%s2287_s8 + $0x20] sm:$0xff] %vm1180_vm1, %v1464_v63  ;;  %1475 = vpow2.f32 %v1266_v61  ;;  %v1267_v0 = vmul.f32 -1.442695, %v967_v62 }
 0x280   :  { %v1466_v3 = vpop.eup %1465 }
 0x281   :  { %v1468_v55 = vpop.eup %1467  ;;  %1186 = vst.msk [vmem:[%s2287_s8 + $0x28] sm:$0xff] %vm1180_vm1, %v1466_v3  ;;  %1477 = vpow2.f32 %v1267_v0 }
 0x282   :  { %v1092_v6 = vadd.f32 1.0, %v1468_v55  ;;  %v910_v7 = vpop.xlane.xlu0 %909 }
 0x283   :  { %v1470_v10 = vpop.eup %1469  ;;  %v968_v56 = vadd.f32 %v2117_v12, %v910_v7 }
 0x284   :  { %1479 = vrcp.f32 %v1092_v6  ;;  %v1093_v15 = vadd.f32 1.0, %v1470_v10  ;;  %v912_v16 = vpop.xlane.xlu1 %911 }
 0x285   :  { %v1268_v17 = vmul.f32 -1.442695, %v968_v56  ;;  %v969_v21 = vadd.f32 %v2117_v12, %v912_v16 }
 0x286   :  { %v1472_v23 = vpop.eup %1471  ;;  %1481 = vrcp.f32 %v1093_v15 }
 0x287   :  { %1187 = vst.msk [vmem:[%s2287_s8 + $0x30] sm:$0xff] %vm1180_vm1, %v1472_v23  ;;  %1483 = vpow2.f32 %v1268_v17  ;;  %v1269_v24 = vmul.f32 -1.442695, %v969_v21 }
 0x288   :  { %v1474_v28 = vpop.eup %1473 }
 0x289   :  { %v1476_v5 = vpop.eup %1475  ;;  %1188 = vst.msk [vmem:[%s2287_s8 + $0x38] sm:$0xff] %vm1180_vm1, %v1474_v28  ;;  %1485 = vpow2.f32 %v1269_v24 }
 0x28a   :  { %v1094_v29 = vadd.f32 1.0, %v1476_v5  ;;  %v914_v33 = vpop.xlane.xlu0 %913 }
 0x28b   :  { %v1478_v11 = vpop.eup %1477  ;;  %v970_v34 = vadd.f32 %v2117_v12, %v914_v33 }
 0x28c   :  { %1487 = vrcp.f32 %v1094_v29  ;;  %v1095_v38 = vadd.f32 1.0, %v1478_v11  ;;  %v916_v40 = vpop.xlane.xlu1 %915 }
 0x28d   :  { %v1270_v45 = vmul.f32 -1.442695, %v970_v34  ;;  %v971_v46 = vadd.f32 %v2117_v12, %v916_v40 }
 0x28e   :  { %v1480_v50 = vpop.eup %1479  ;;  %1489 = vrcp.f32 %v1095_v38 }
 0x28f   :  { %1189 = vst.msk [vmem:[%s2287_s8 + $0x40] sm:$0xff] %vm1180_vm1, %v1480_v50  ;;  %1491 = vpow2.f32 %v1270_v45  ;;  %v1271_v51 = vmul.f32 -1.442695, %v971_v46 }
 0x290   :  { %v1482_v57 = vpop.eup %1481 }
 0x291   :  { %v1484_v1 = vpop.eup %1483  ;;  %1190 = vst.msk [vmem:[%s2287_s8 + $0x48] sm:$0xff] %vm1180_vm1, %v1482_v57  ;;  %1493 = vpow2.f32 %v1271_v51 }
 0x292   :  { %v1096_v2 = vadd.f32 1.0, %v1484_v1  ;;  %v918_v4 = vpop.xlane.xlu0 %917 }
 0x293   :  { %v1486_v8 = vpop.eup %1485  ;;  %v972_v9 = vadd.f32 %v2117_v12, %v918_v4 }
 0x294   :  { %1495 = vrcp.f32 %v1096_v2  ;;  %v1097_v13 = vadd.f32 1.0, %v1486_v8  ;;  %v920_v14 = vpop.xlane.xlu1 %919 }
 0x295   :  { %v1272_v18 = vmul.f32 -1.442695, %v972_v9  ;;  %v973_v19 = vadd.f32 %v2117_v12, %v920_v14 }
 0x296   :  { %v1488_v20 = vpop.eup %1487  ;;  %1497 = vrcp.f32 %v1097_v13 }
 0x297   :  { %1191 = vst.msk [vmem:[%s2287_s8 + $0x50] sm:$0xff] %vm1180_vm1, %v1488_v20  ;;  %1499 = vpow2.f32 %v1272_v18  ;;  %v1273_v22 = vmul.f32 -1.442695, %v973_v19 }
 0x298   :  { %v1490_v25 = vpop.eup %1489 }
 0x299   :  { %v1492_v26 = vpop.eup %1491  ;;  %1192 = vst.msk [vmem:[%s2287_s8 + $0x58] sm:$0xff] %vm1180_vm1, %v1490_v25  ;;  %1501 = vpow2.f32 %v1273_v22 }
 0x29a   :  { %v1098_v27 = vadd.f32 1.0, %v1492_v26  ;;  %v922_v30 = vpop.xlane.xlu0 %921 }
 0x29b   :  { %v1494_v31 = vpop.eup %1493  ;;  %v974_v32 = vadd.f32 %v2117_v12, %v922_v30 }
 0x29c   :  { %1503 = vrcp.f32 %v1098_v27  ;;  %v1099_v35 = vadd.f32 1.0, %v1494_v31  ;;  %v924_v36 = vpop.xlane.xlu1 %923 }
 0x29d   :  { %v1274_v37 = vmul.f32 -1.442695, %v974_v32  ;;  %v975_v39 = vadd.f32 %v2117_v12, %v924_v36 }
 0x29e   :  { %v1496_v41 = vpop.eup %1495  ;;  %1505 = vrcp.f32 %v1099_v35 }
 0x29f   :  { %1193 = vst.msk [vmem:[%s2287_s8 + $0x60] sm:$0xff] %vm1180_vm1, %v1496_v41  ;;  %1507 = vpow2.f32 %v1274_v37  ;;  %v1275_v42 = vmul.f32 -1.442695, %v975_v39 }
 0x2a0   :  { %v1498_v43 = vpop.eup %1497 }
 0x2a1   :  { %v1500_v44 = vpop.eup %1499  ;;  %1194 = vst.msk [vmem:[%s2287_s8 + $0x68] sm:$0xff] %vm1180_vm1, %v1498_v43  ;;  %1509 = vpow2.f32 %v1275_v42 }
 0x2a2   :  { %v1100_v47 = vadd.f32 1.0, %v1500_v44  ;;  %v926_v48 = vpop.xlane.xlu0 %925 }
 0x2a3   :  { %v1502_v49 = vpop.eup %1501  ;;  %v976_v52 = vadd.f32 %v2117_v12, %v926_v48 }
 0x2a4   :  { %1511 = vrcp.f32 %v1100_v47  ;;  %v1101_v53 = vadd.f32 1.0, %v1502_v49  ;;  %v928_v54 = vpop.xlane.xlu1 %927 }
 0x2a5   :  { %v1276_v58 = vmul.f32 -1.442695, %v976_v52  ;;  %v977_v59 = vadd.f32 %v2117_v12, %v928_v54 }
 0x2a6   :  { %v1504_v60 = vpop.eup %1503  ;;  %1513 = vrcp.f32 %v1101_v53 }
 0x2a7   :  { %1195 = vst.msk [vmem:[%s2287_s8 + $0x70] sm:$0xff] %vm1180_vm1, %v1504_v60  ;;  %1515 = vpow2.f32 %v1276_v58  ;;  %v1277_v61 = vmul.f32 -1.442695, %v977_v59 }
 0x2a8   :  { %v1506_v62 = vpop.eup %1505 }
 0x2a9   :  { %v1508_v63 = vpop.eup %1507  ;;  %1196 = vst.msk [vmem:[%s2287_s8 + $0x78] sm:$0xff] %vm1180_vm1, %v1506_v62  ;;  %1517 = vpow2.f32 %v1277_v61 }
 0x2aa   :  { %v1102_v0 = vadd.f32 1.0, %v1508_v63  ;;  %v930_v3 = vpop.xlane.xlu0 %929 }
 0x2ab   :  { %v1510_v55 = vpop.eup %1509  ;;  %v978_v6 = vadd.f32 %v2117_v12, %v930_v3 }
 0x2ac   :  { %1519 = vrcp.f32 %v1102_v0  ;;  %v1103_v7 = vadd.f32 1.0, %v1510_v55  ;;  %v932_v10 = vpop.xlane.xlu1 %931 }
 0x2ad   :  { %v1278_v56 = vmul.f32 -1.442695, %v978_v6  ;;  %v979_v15 = vadd.f32 %v2117_v12, %v932_v10 }
 0x2ae   :  { %v1512_v16 = vpop.eup %1511  ;;  %1521 = vrcp.f32 %v1103_v7 }
 0x2af   :  { %1197 = vst.msk [vmem:[%s2287_s8 + $0x80] sm:$0xff] %vm1180_vm1, %v1512_v16  ;;  %1523 = vpow2.f32 %v1278_v56  ;;  %v1279_v17 = vmul.f32 -1.442695, %v979_v15 }
 0x2b0   :  { %v1514_v21 = vpop.eup %1513 }
 0x2b1   :  { %v1516_v23 = vpop.eup %1515  ;;  %1198 = vst.msk [vmem:[%s2287_s8 + $0x88] sm:$0xff] %vm1180_vm1, %v1514_v21  ;;  %1525 = vpow2.f32 %v1279_v17 }
 0x2b2   :  { %v1104_v24 = vadd.f32 1.0, %v1516_v23  ;;  %v934_v28 = vpop.xlane.xlu0 %933 }
 0x2b3   :  { %v1518_v5 = vpop.eup %1517  ;;  %v980_v29 = vadd.f32 %v2117_v12, %v934_v28 }
 0x2b4   :  { %1527 = vrcp.f32 %v1104_v24  ;;  %v1105_v33 = vadd.f32 1.0, %v1518_v5  ;;  %v936_v11 = vpop.xlane.xlu1 %935 }
 0x2b5   :  { %v1280_v34 = vmul.f32 -1.442695, %v980_v29  ;;  %v981_v38 = vadd.f32 %v2117_v12, %v936_v11 }
 0x2b6   :  { %v1520_v40 = vpop.eup %1519  ;;  %1529 = vrcp.f32 %v1105_v33 }
 0x2b7   :  { %1199 = vst.msk [vmem:[%s2287_s8 + $0x90] sm:$0xff] %vm1180_vm1, %v1520_v40  ;;  %1531 = vpow2.f32 %v1280_v34  ;;  %v1281_v45 = vmul.f32 -1.442695, %v981_v38 }
 0x2b8   :  { %v1522_v46 = vpop.eup %1521 }
 0x2b9   :  { %v1524_v50 = vpop.eup %1523  ;;  %1200 = vst.msk [vmem:[%s2287_s8 + $0x98] sm:$0xff] %vm1180_vm1, %v1522_v46  ;;  %1533 = vpow2.f32 %v1281_v45 }
 0x2ba   :  { %v1106_v51 = vadd.f32 1.0, %v1524_v50  ;;  %v938_v57 = vpop.xlane.xlu0 %937 }
 0x2bb   :  { %v1526_v1 = vpop.eup %1525  ;;  %v982_v2 = vadd.f32 %v2117_v12, %v938_v57 }
 0x2bc   :  { %1535 = vrcp.f32 %v1106_v51  ;;  %v1107_v4 = vadd.f32 1.0, %v1526_v1  ;;  %v940_v8 = vpop.xlane.xlu1 %939 }
 0x2bd   :  { %v1282_v9 = vmul.f32 -1.442695, %v982_v2  ;;  %v983_v13 = vadd.f32 %v2117_v12, %v940_v8 }
 0x2be   :  { %v1528_v14 = vpop.eup %1527  ;;  %1537 = vrcp.f32 %v1107_v4 }
 0x2bf   :  { %1201 = vst.msk [vmem:[%s2287_s8 + $0xa0] sm:$0xff] %vm1180_vm1, %v1528_v14  ;;  %1539 = vpow2.f32 %v1282_v9  ;;  %v1283_v18 = vmul.f32 -1.442695, %v983_v13 }
 0x2c0   :  { %v1530_v19 = vpop.eup %1529 }
 0x2c1   :  { %v1532_v20 = vpop.eup %1531  ;;  %1202 = vst.msk [vmem:[%s2287_s8 + $0xa8] sm:$0xff] %vm1180_vm1, %v1530_v19  ;;  %1541 = vpow2.f32 %v1283_v18 }
 0x2c2   :  { %v1108_v22 = vadd.f32 1.0, %v1532_v20  ;;  %v942_v25 = vpop.xlane.xlu0 %941 }
 0x2c3   :  { %v1534_v26 = vpop.eup %1533  ;;  %v984_v27 = vadd.f32 %v2117_v12, %v942_v25 }
 0x2c4   :  { %1543 = vrcp.f32 %v1108_v22  ;;  %v1109_v30 = vadd.f32 1.0, %v1534_v26  ;;  %v944_v31 = vpop.xlane.xlu1 %943 }
 0x2c5   :  { %v1284_v32 = vmul.f32 -1.442695, %v984_v27  ;;  %v985_v35 = vadd.f32 %v2117_v12, %v944_v31 }
 0x2c6   :  { %v1536_v36 = vpop.eup %1535  ;;  %1545 = vrcp.f32 %v1109_v30 }
 0x2c7   :  { %1203 = vst.msk [vmem:[%s2287_s8 + $0xb0] sm:$0xff] %vm1180_vm1, %v1536_v36  ;;  %1547 = vpow2.f32 %v1284_v32  ;;  %v1285_v37 = vmul.f32 -1.442695, %v985_v35 }
 0x2c8   :  { %v1538_v39 = vpop.eup %1537 }
 0x2c9   :  { %v1540_v41 = vpop.eup %1539  ;;  %1204 = vst.msk [vmem:[%s2287_s8 + $0xb8] sm:$0xff] %vm1180_vm1, %v1538_v39  ;;  %1549 = vpow2.f32 %v1285_v37 }
 0x2ca   :  { %v1110_v42 = vadd.f32 1.0, %v1540_v41  ;;  %v946_v43 = vpop.xlane.xlu0 %945 }
 0x2cb   :  { %v1542_v44 = vpop.eup %1541  ;;  %v986_v47 = vadd.f32 %v2117_v12, %v946_v43 }
 0x2cc   :  { %1551 = vrcp.f32 %v1110_v42  ;;  %v1111_v48 = vadd.f32 1.0, %v1542_v44  ;;  %v948_v49 = vpop.xlane.xlu1 %947 }
 0x2cd   :  { %v1286_v52 = vmul.f32 -1.442695, %v986_v47  ;;  %v987_v53 = vadd.f32 %v2117_v12, %v948_v49 }
 0x2ce   :  { %v1544_v54 = vpop.eup %1543  ;;  %1553 = vrcp.f32 %v1111_v48 }
 0x2cf   :  { %1205 = vst.msk [vmem:[%s2287_s8 + $0xc0] sm:$0xff] %vm1180_vm1, %v1544_v54  ;;  %1555 = vpow2.f32 %v1286_v52  ;;  %v1287_v58 = vmul.f32 -1.442695, %v987_v53 }
 0x2d0   :  { %v1546_v59 = vpop.eup %1545 }
 0x2d1   :  { %v1548_v60 = vpop.eup %1547  ;;  %1206 = vst.msk [vmem:[%s2287_s8 + $0xc8] sm:$0xff] %vm1180_vm1, %v1546_v59  ;;  %1557 = vpow2.f32 %v1287_v58 }
 0x2d2   :  { %v1112_v61 = vadd.f32 1.0, %v1548_v60 }
 0x2d3   :  { %v1550_v62 = vpop.eup %1549 }
 0x2d4   :  { %1559 = vrcp.f32 %v1112_v61  ;;  %v1113_v12 = vadd.f32 1.0, %v1550_v62 }
 0x2d6   :  { %v1552_v63 = vpop.eup %1551  ;;  %1561 = vrcp.f32 %v1113_v12 }
 0x2d7   :  { %1207 = vst.msk [vmem:[%s2287_s8 + $0xd0] sm:$0xff] %vm1180_vm1, %v1552_v63 }
 0x2d8   :  { %v1554_v0 = vpop.eup %1553 }
 0x2d9   :  { %v1556_v3 = vpop.eup %1555  ;;  %1208 = vst.msk [vmem:[%s2287_s8 + $0xd8] sm:$0xff] %vm1180_vm1, %v1554_v0 }
 0x2da   :  { %v1114_v55 = vadd.f32 1.0, %v1556_v3 }
 0x2db   :  { %v1558_v6 = vpop.eup %1557 }
 0x2dc   :  { %1563 = vrcp.f32 %v1114_v55  ;;  %v1115_v7 = vadd.f32 1.0, %v1558_v6 }
 0x2de   :  { %v1560_v10 = vpop.eup %1559  ;;  %1565 = vrcp.f32 %v1115_v7 }
 0x2df   :  { %1209 = vst.msk [vmem:[%s2287_s8 + $0xe0] sm:$0xff] %vm1180_vm1, %v1560_v10 }
 0x2e0   :  { %v1562_v56 = vpop.eup %1561 }
 0x2e1   :  { %1210 = vst.msk [vmem:[%s2287_s8 + $0xe8] sm:$0xff] %vm1180_vm1, %v1562_v56 }
 0x2e6   :  { %v1564_v15 = vpop.eup %1563 }
 0x2e7   :  { %1211 = vst.msk [vmem:[%s2287_s8 + $0xf0] sm:$0xff] %vm1180_vm1, %v1564_v15 }
 0x2e8   :  { %v1566_v16 = vpop.eup %1565 }
 0x2e9   :  { %1212 = vst.msk [vmem:[%s2287_s8 + $0xf8] sm:$0xff] %vm1180_vm1, %v1566_v16 }

</bundles_post_ra>
